<compile_context>
chip_gen: v7x
topology: tpu7x:2x2x1
jax: 0.10.0
libtpu: 0.0.40
codegen_flags: <defaults>
</compile_context>

<pallas_src>
import numpy as np
import jax
import jax.numpy as jnp
from jax.experimental import pallas as pl
from jax.experimental.pallas import tpu as pltpu


def _round_up(x, m):
    return ((x + m - 1) // m) * m


# ---------------------------------------------------------------------------
# Kernel 1: fused phi/psi DenseNet MLPs ([2, 64, 128, I*O] with ReLU),
# lane-dense on N, tiled over N, outputs (C, N) in bfloat16.
# ---------------------------------------------------------------------------
def _mlp_kernel(g_ref,
                pw1, pb1, pw2, pb2, pw3, pb3,
                qw1, qb1, qw2, qb2, qw3, qb3,
                phi_ref, psi_ref):
    g0 = g_ref[0:1, :]                                     # (1, TN)
    g1 = g_ref[1:2, :]                                     # (1, TN)

    def tower(w1, b1, w2, b2, w3, b3):
        # Layer 1 has K=2 -> VPU broadcasts instead of a degenerate MXU matmul.
        h = w1[:, 0:1] * g0 + w1[:, 1:2] * g1 + b1[...]    # (64, TN)
        h = jnp.maximum(h, 0.0)
        h = jnp.dot(w2[...], h, preferred_element_type=jnp.float32) + b2[...]
        h = jnp.maximum(h, 0.0)                            # (128, TN)
        return jnp.dot(w3[...], h, preferred_element_type=jnp.float32) + b3[...]

    phi_ref[...] = tower(pw1, pb1, pw2, pb2, pw3, pb3).astype(phi_ref.dtype)
    psi_ref[...] = tower(qw1, qb1, qw2, qb2, qw3, qb3).astype(psi_ref.dtype)


def mlp_pallas(grid_t, phi_params, psi_params, *, tn):
    """grid_t: (2, NP) f32; params in transposed layout (see _prep_tower_params).

    Returns (phi, psi), each (C, NP) bfloat16, C = in_channels*out_channels."""
    NP = grid_t.shape[1]
    C = phi_params[4].shape[0]
    d1 = phi_params[0].shape[0]        # 64
    d2 = phi_params[2].shape[0]        # 128

    all_params = list(phi_params) + list(psi_params)
    in_specs = [pl.BlockSpec((2, tn), lambda i: (0, i))]
    in_specs += [pl.BlockSpec(p.shape, lambda i: (0, 0)) for p in all_params]

    flops = 2 * 2 * NP * (2 * d1 + d1 * d2 + d2 * C)
    param_bytes = 4 * sum(int(np.prod(p.shape)) for p in all_params)
    bytes_accessed = 4 * 2 * NP + param_bytes + 2 * 2 * C * NP

    return pl.pallas_call(
        _mlp_kernel,
        out_shape=(jax.ShapeDtypeStruct((C, NP), jnp.bfloat16),
                   jax.ShapeDtypeStruct((C, NP), jnp.bfloat16)),
        grid=(NP // tn,),
        in_specs=in_specs,
        out_specs=(pl.BlockSpec((C, tn), lambda i: (0, i)),
                   pl.BlockSpec((C, tn), lambda i: (0, i))),
        compiler_params=pltpu.CompilerParams(
            dimension_semantics=("parallel",),
            vmem_limit_bytes=64 * 1024 * 1024,
        ),
        cost_estimate=pl.CostEstimate(
            flops=flops, transcendentals=0, bytes_accessed=bytes_accessed),
    )(grid_t, *all_params)


# ---------------------------------------------------------------------------
# Kernel 2 (stage 1): t[i,b,o] = sum_n x[i,b,n] * phi[i,o,n]
#   x_ref:   (I, TB, TNX)  bf16
#   phi_ref: (I, O, TNX)   bf16   (already includes the 1/Nx factor)
#   t_ref:   (I, TB, O)    f32    (resident output block across the Nx axis)
# ---------------------------------------------------------------------------
def _stage1_kernel(x_ref, phi_ref, t_ref):
    @pl.when(pl.program_id(1) == 0)
    def _init():
        t_ref[...] = jnp.zeros_like(t_ref)

    t_ref[...] += jax.lax.dot_general(
        x_ref[...], phi_ref[...],
        dimension_numbers=(((2,), (2,)), ((0,), (0,))),
        preferred_element_type=jnp.float32,
    )


def stage1_pallas(x_ibn, phi_r, *, tb, tnx):
    """x_ibn: (I, B, NP) bf16; phi_r: (I, O, NP) bf16 -> t: (I, B, O) f32."""
    I, B, NP = x_ibn.shape
    O = phi_r.shape[1]
    grid = (B // tb, NP // tnx)

    flops = 2 * I * B * O * NP
    bytes_accessed = 2 * I * B * NP + 2 * (B // tb) * I * O * NP + 4 * I * B * O

    return pl.pallas_call(
        _stage1_kernel,
        out_shape=jax.ShapeDtypeStruct((I, B, O), jnp.float32),
        grid=grid,
        in_specs=[
            pl.BlockSpec((I, tb, tnx), lambda b, k: (0, b, k)),
            pl.BlockSpec((I, O, tnx), lambda b, k: (0, 0, k)),
        ],
        out_specs=pl.BlockSpec((I, tb, O), lambda b, k: (0, b, 0)),
        compiler_params=pltpu.CompilerParams(
            dimension_semantics=("parallel", "arbitrary"),
            vmem_limit_bytes=64 * 1024 * 1024,
        ),
        cost_estimate=pl.CostEstimate(
            flops=flops, transcendentals=0, bytes_accessed=bytes_accessed),
    )(x_ibn, phi_r)


# ---------------------------------------------------------------------------
# Kernel 3 (stage 2): out[b,o,m] = sum_i t[o,b,i] * psi[o,i,m], tiled over Ny.
#   t_ref:   (O, B, I)    f32  (tiny, constant index map -> resident)
#   psi_ref: (O, I, TNY)  bf16 (streamed from HBM exactly once)
#   o_ref:   (B, O, TNY)  f32
# ---------------------------------------------------------------------------
def _stage2_kernel(t_ref, psi_ref, o_ref):
    n_oc = t_ref.shape[0]
    for oc in range(n_oc):                                 # small & static
        t_o = t_ref[oc]                                    # (B, I) f32
        psi_o = psi_ref[oc].astype(jnp.float32)            # (I, TNY)
        o_ref[:, oc, :] = jax.lax.dot_general(
            t_o, psi_o,
            dimension_numbers=(((1,), (0,)), ((), ())),
            preferred_element_type=jnp.float32,
        )


def stage2_pallas(t_obi, psi_r, *, tny):
    """t_obi: (O, B, I) f32; psi_r: (O, I, NP) bf16 -> (B, O, NP) f32."""
    O, B, I = t_obi.shape
    NP = psi_r.shape[2]

    flops = 2 * B * O * I * NP
    bytes_accessed = 4 * O * B * I + 2 * O * I * NP + 4 * B * O * NP

    return pl.pallas_call(
        _stage2_kernel,
        out_shape=jax.ShapeDtypeStruct((B, O, NP), jnp.float32),
        grid=(NP // tny,),
        in_specs=[
            pl.BlockSpec((O, B, I), lambda m: (0, 0, 0)),
            pl.BlockSpec((O, I, tny), lambda m: (0, 0, m)),
        ],
        out_specs=pl.BlockSpec((B, O, tny), lambda m: (0, 0, m)),
        compiler_params=pltpu.CompilerParams(
            dimension_semantics=("parallel",),
            vmem_limit_bytes=64 * 1024 * 1024,
        ),
        cost_estimate=pl.CostEstimate(
            flops=flops, transcendentals=0, bytes_accessed=bytes_accessed),
    )(t_obi, psi_r)


# ---------------------------------------------------------------------------
# Plain-JAX glue / parameter setup
# ---------------------------------------------------------------------------
def init_densenet_params(key, layers):
    """Deterministic PyTorch-Linear-like init. W stored as (in, out), b as (1, out)."""
    params = []
    for j in range(len(layers) - 1):
        key, kw, kb = jax.random.split(key, 3)
        bound = 1.0 / np.sqrt(layers[j])
        W = jax.random.uniform(kw, (layers[j], layers[j + 1]), jnp.float32, -bound, bound)
        b = jax.random.uniform(kb, (1, layers[j + 1]), jnp.float32, -bound, bound)
        params += [W, b]
    return params


def make_grid(S1, S2):
    gx = jnp.linspace(0.0, 1.0, S1, dtype=jnp.float32)
    gy = jnp.linspace(0.0, 1.0, S2, dtype=jnp.float32)
    X, Y = jnp.meshgrid(gx, gy, indexing="ij")
    return jnp.stack((X, Y), axis=-1).reshape(S1 * S2, 2)   # row n = s1*S2 + s2


def _prep_tower_params(params, out_channels, in_channels, *, order, scale=1.0):
    """Transpose to the lane-dense layout used by _mlp_kernel, permute the last
    layer's channels so the kernel output reshapes straight to the order the
    contraction wants, and fold `scale` (1/Nx for phi) into layer 3.

      order == "io": output row c = i*O + o  (phi -> reshape (I, O, N))
      order == "oi": output row c = o*I + i  (psi -> reshape (O, I, N))
    """
    W1, b1, W2, b2, W3, b3 = params
    O, I = out_channels, in_channels
    if order == "io":
        perm = jnp.arange(O * I).reshape(O, I).T.reshape(-1)   # perm[i*O+o] = o*I+i
    else:
        perm = jnp.arange(O * I)
    W3p = (W3 * scale)[:, perm]
    b3p = (b3 * scale)[:, perm]
    return [W1.T, b1.T, W2.T, b2.T, W3p.T, b3p.T]
    # shapes: (64,2), (64,1), (128,64), (128,1), (C,128), (C,1)


def _pick_tb(batch, in_channels, tnx):
    """Stage-1 batch tile: must be a multiple of 8 or the full batch (block
    layout rule). Prefer two batch tiles so the 'parallel' axis can split
    across v7x's two TensorCores, capped so the double-buffered bf16 x block
    stays well inside VMEM."""
    budget = 8 * 1024 * 1024
    per_b = in_channels * tnx * 2 * 2          # bf16, double-buffered
    if batch % 16 == 0 and (batch // 2) * per_b <= budget:
        return batch // 2
    if batch * per_b <= budget:
        return batch
    best = batch
    for tb in range(8, batch, 8):
        if batch % tb == 0 and tb * per_b <= budget:
            best = tb
    return best


def lowrank2d_forward(x, phi_params, psi_params, in_channels, out_channels):
    """x: (B, C_in, S1, S2) float32 -> (B, C_out, Ny).  (gridy defaults to gridx.)"""
    B, I, S1, S2 = x.shape
    assert I == in_channels
    O = out_channels
    Nx = S1 * S2
    Ny = Nx

    # Tile & pad: keep the lane dim a multiple of 256 and never fall back to a
    # full-extent block for odd grid sizes.
    TN = min(2048, _round_up(Nx, 256))
    NP = _round_up(Nx, TN)

    grid_pts = make_grid(S1, S2)                                  # (Nx, 2)
    grid_t = jnp.pad(grid_pts.T, ((0, 0), (0, NP - Nx)))          # (2, NP)

    phi_p = _prep_tower_params(phi_params, O, I, order="io", scale=1.0 / Nx)
    psi_p = _prep_tower_params(psi_params, O, I, order="oi")

    phi_flat, psi_flat = mlp_pallas(grid_t, phi_p, psi_p, tn=TN)  # (I*O, NP) bf16 x2
    phi_r = phi_flat.reshape(I, O, NP)
    psi_r = psi_flat.reshape(O, I, NP)

    # (B, I, Nx) -> (I, B, NP) bf16, zero-padded along n (zeros don't change the
    # stage-1 sum; the 1/Nx folded into phi uses the true Nx).
    x_ibn = jnp.transpose(x.reshape(B, I, Nx), (1, 0, 2))
    x_ibn = jnp.pad(x_ibn, ((0, 0), (0, 0), (0, NP - Nx))).astype(jnp.bfloat16)

    TB = _pick_tb(B, I, TN)
    t = stage1_pallas(x_ibn, phi_r, tb=TB, tnx=TN)                # (I, B, O) f32
    t_obi = jnp.transpose(t, (2, 1, 0))                           # (O, B, I), tiny

    out = stage2_pallas(t_obi, psi_r, tny=TN)                     # (B, O, NP) f32
    return out[:, :, :Ny]


# ---------------------------------------------------------------------------
# Exact float64 host reference (for correctness check)
# ---------------------------------------------------------------------------
def _lowrank2d_ref_f64(x, phi_params, psi_params, in_channels, out_channels):
    B, I, S1, S2 = x.shape
    Nx = S1 * S2
    g = np.asarray(make_grid(S1, S2), dtype=np.float64)

    def mlp(params):
        p = [np.asarray(t, dtype=np.float64) for t in params]
        h = np.maximum(g @ p[0] + p[1], 0.0)
        h = np.maximum(h @ p[2] + p[3], 0.0)
        return h @ p[4] + p[5]

    phi_eval = mlp(phi_params).reshape(Nx, out_channels, in_channels)
    psi_eval = mlp(psi_params).reshape(Nx, out_channels, in_channels)
    xf = np.asarray(x, dtype=np.float64).reshape(B, in_channels, Nx)
    return np.einsum("noi,bin,moi->bom", phi_eval, xf, psi_eval) / Nx


# ---------------------------------------------------------------------------
if __name__ == "__main__":
    B, in_channels, out_channels, S = 2, 4, 4, 16

    key = jax.random.PRNGKey(0)
    kx, kphi, kpsi = jax.random.split(key, 3)

    x = jax.random.normal(kx, (B, in_channels, S, S), dtype=jnp.float32)

    layer_sizes = [2, 64, 128, in_channels * out_channels]
    phi_params = init_densenet_params(kphi, layer_sizes)
    psi_params = init_densenet_params(kpsi, layer_sizes)

    out = lowrank2d_forward(x, phi_params, psi_params, in_channels, out_channels)
    out = jax.block_until_ready(out)
    out_np = np.asarray(out, dtype=np.float64)

    ref = _lowrank2d_ref_f64(np.asarray(x), phi_params, psi_params,
                             in_channels, out_channels)

    assert out.shape == (B, out_channels, S * S), out.shape
    # phi/psi/x are streamed through the contraction in bfloat16 (f32
    # accumulation), and the f32 MLP matmuls may use bf16-multipass MXU
    # internals, so compare against an exact float64 host reference with a
    # scale-relative tolerance; layout/indexing bugs would show up as O(scale).
    scale = float(np.max(np.abs(ref)))
    max_err = float(np.max(np.abs(out_np - ref)))
    assert max_err <= 3e-2 * scale + 3e-4, (max_err, scale)
    print("KERNEL_OK")
</pallas_src>

<mosaic_0001>
module attributes {stable_mosaic.version = 11 : i64} {
  func.func @_mlp_kernel(%arg0: i32, %arg1: memref<2x256xf32, #tpu.memory_space<vmem>>, %arg2: memref<64x2xf32, #tpu.memory_space<vmem>>, %arg3: memref<64x1xf32, #tpu.memory_space<vmem>>, %arg4: memref<128x64xf32, #tpu.memory_space<vmem>>, %arg5: memref<128x1xf32, #tpu.memory_space<vmem>>, %arg6: memref<16x128xf32, #tpu.memory_space<vmem>>, %arg7: memref<16x1xf32, #tpu.memory_space<vmem>>, %arg8: memref<64x2xf32, #tpu.memory_space<vmem>>, %arg9: memref<64x1xf32, #tpu.memory_space<vmem>>, %arg10: memref<128x64xf32, #tpu.memory_space<vmem>>, %arg11: memref<128x1xf32, #tpu.memory_space<vmem>>, %arg12: memref<16x128xf32, #tpu.memory_space<vmem>>, %arg13: memref<16x1xf32, #tpu.memory_space<vmem>>, %arg14: memref<16x256xbf16, #tpu.memory_space<vmem>>, %arg15: memref<16x256xbf16, #tpu.memory_space<vmem>>) attributes {dimension_semantics = [#tpu.dimension_semantics<parallel>], iteration_bounds = array<i64: 1>, scalar_prefetch = 0 : i64, scratch_operands = 0 : i64, tpu.core_type = #tpu.core_type<tc>, window_params = [{transform_indices = @transform_0, window_bounds = array<i64: 2, 256>}, {pipeline_mode = #tpu.pipeline_mode<synchronous>, transform_indices = @transform_1, window_bounds = array<i64: 64, 2>}, {pipeline_mode = #tpu.pipeline_mode<synchronous>, transform_indices = @transform_2, window_bounds = array<i64: 64, 1>}, {pipeline_mode = #tpu.pipeline_mode<synchronous>, transform_indices = @transform_3, window_bounds = array<i64: 128, 64>}, {pipeline_mode = #tpu.pipeline_mode<synchronous>, transform_indices = @transform_4, window_bounds = array<i64: 128, 1>}, {pipeline_mode = #tpu.pipeline_mode<synchronous>, transform_indices = @transform_5, window_bounds = array<i64: 16, 128>}, {pipeline_mode = #tpu.pipeline_mode<synchronous>, transform_indices = @transform_6, window_bounds = array<i64: 16, 1>}, {pipeline_mode = #tpu.pipeline_mode<synchronous>, transform_indices = @transform_7, window_bounds = array<i64: 64, 2>}, {pipeline_mode = #tpu.pipeline_mode<synchronous>, transform_indices = @transform_8, window_bounds = array<i64: 64, 1>}, {pipeline_mode = #tpu.pipeline_mode<synchronous>, transform_indices = @transform_9, window_bounds = array<i64: 128, 64>}, {pipeline_mode = #tpu.pipeline_mode<synchronous>, transform_indices = @transform_10, window_bounds = array<i64: 128, 1>}, {pipeline_mode = #tpu.pipeline_mode<synchronous>, transform_indices = @transform_11, window_bounds = array<i64: 16, 128>}, {pipeline_mode = #tpu.pipeline_mode<synchronous>, transform_indices = @transform_12, window_bounds = array<i64: 16, 1>}, {transform_indices = @transform_13, window_bounds = array<i64: 16, 256>}, {transform_indices = @transform_14, window_bounds = array<i64: 16, 256>}]} {
    %c0 = arith.constant 0 : index
    %c0_0 = arith.constant 0 : index
    %0 = vector.load %arg1[%c0, %c0_0] : memref<2x256xf32, #tpu.memory_space<vmem>>, vector<1x256xf32>
    %c1 = arith.constant 1 : index
    %c0_1 = arith.constant 0 : index
    %1 = vector.load %arg1[%c1, %c0_1] : memref<2x256xf32, #tpu.memory_space<vmem>>, vector<1x256xf32>
    %c0_2 = arith.constant 0 : index
    %c0_3 = arith.constant 0 : index
    %2 = vector.load %arg2[%c0_2, %c0_3] : memref<64x2xf32, #tpu.memory_space<vmem>>, vector<64x1xf32>
    %3 = vector.broadcast %2 : vector<64x1xf32> to vector<64x256xf32>
    %4 = vector.broadcast %0 : vector<1x256xf32> to vector<64x256xf32>
    %5 = arith.mulf %3, %4 : vector<64x256xf32>
    %c0_4 = arith.constant 0 : index
    %c1_5 = arith.constant 1 : index
    %6 = vector.load %arg2[%c0_4, %c1_5] : memref<64x2xf32, #tpu.memory_space<vmem>>, vector<64x1xf32>
    %7 = vector.broadcast %6 : vector<64x1xf32> to vector<64x256xf32>
    %8 = vector.broadcast %1 : vector<1x256xf32> to vector<64x256xf32>
    %9 = arith.mulf %7, %8 : vector<64x256xf32>
    %10 = arith.addf %5, %9 : vector<64x256xf32>
    %c0_6 = arith.constant 0 : index
    %c0_7 = arith.constant 0 : index
    %11 = vector.load %arg3[%c0_6, %c0_7] : memref<64x1xf32, #tpu.memory_space<vmem>>, vector<64x1xf32>
    %12 = vector.broadcast %11 : vector<64x1xf32> to vector<64x256xf32>
    %13 = arith.addf %10, %12 : vector<64x256xf32>
    %cst = arith.constant 0.000000e+00 : f32
    %14 = vector.broadcast %cst : f32 to vector<64x256xf32>
    %15 = arith.maximumf %13, %14 : vector<64x256xf32>
    %c0_8 = arith.constant 0 : index
    %c0_9 = arith.constant 0 : index
    %16 = vector.load %arg4[%c0_8, %c0_9] : memref<128x64xf32, #tpu.memory_space<vmem>>, vector<128x64xf32>
    %cst_10 = arith.constant dense<0.000000e+00> : vector<128x256xf32>
    %17 = tpu.matmul %16, %15, %cst_10 {dimension_numbers = #tpu.dot_dimension_numbers<[1], [0], [0], [1], [0, 0, 1, 1], [], []>} : vector<128x64xf32>, vector<64x256xf32>, vector<128x256xf32> -> vector<128x256xf32>
    %c0_11 = arith.constant 0 : index
    %c0_12 = arith.constant 0 : index
    %18 = vector.load %arg5[%c0_11, %c0_12] : memref<128x1xf32, #tpu.memory_space<vmem>>, vector<128x1xf32>
    %19 = vector.broadcast %18 : vector<128x1xf32> to vector<128x256xf32>
    %20 = arith.addf %17, %19 : vector<128x256xf32>
    %cst_13 = arith.constant 0.000000e+00 : f32
    %21 = vector.broadcast %cst_13 : f32 to vector<128x256xf32>
    %22 = arith.maximumf %20, %21 : vector<128x256xf32>
    %c0_14 = arith.constant 0 : index
    %c0_15 = arith.constant 0 : index
    %23 = vector.load %arg6[%c0_14, %c0_15] : memref<16x128xf32, #tpu.memory_space<vmem>>, vector<16x128xf32>
    %cst_16 = arith.constant dense<0.000000e+00> : vector<16x256xf32>
    %24 = tpu.matmul %23, %22, %cst_16 {dimension_numbers = #tpu.dot_dimension_numbers<[1], [0], [0], [1], [0, 0, 1, 1], [], []>} : vector<16x128xf32>, vector<128x256xf32>, vector<16x256xf32> -> vector<16x256xf32>
    %c0_17 = arith.constant 0 : index
    %c0_18 = arith.constant 0 : index
    %25 = vector.load %arg7[%c0_17, %c0_18] : memref<16x1xf32, #tpu.memory_space<vmem>>, vector<16x1xf32>
    %26 = vector.broadcast %25 : vector<16x1xf32> to vector<16x256xf32>
    %27 = arith.addf %24, %26 : vector<16x256xf32>
    %28 = arith.truncf %27 : vector<16x256xf32> to vector<16x256xbf16>
    %c0_19 = arith.constant 0 : index
    %c0_20 = arith.constant 0 : index
    %29 = vector.load %arg14[%c0_19, %c0_20] : memref<16x256xbf16, #tpu.memory_space<vmem>>, vector<16x256xbf16>
    tpu.vector_store %arg14[%c0_19, %c0_20], %28 {strides = array<i32>} : memref<16x256xbf16, #tpu.memory_space<vmem>>, vector<16x256xbf16>,
    %c0_21 = arith.constant 0 : index
    %c0_22 = arith.constant 0 : index
    %30 = vector.load %arg8[%c0_21, %c0_22] : memref<64x2xf32, #tpu.memory_space<vmem>>, vector<64x1xf32>
    %31 = vector.broadcast %30 : vector<64x1xf32> to vector<64x256xf32>
    %32 = vector.broadcast %0 : vector<1x256xf32> to vector<64x256xf32>
    %33 = arith.mulf %31, %32 : vector<64x256xf32>
    %c0_23 = arith.constant 0 : index
    %c1_24 = arith.constant 1 : index
    %34 = vector.load %arg8[%c0_23, %c1_24] : memref<64x2xf32, #tpu.memory_space<vmem>>, vector<64x1xf32>
    %35 = vector.broadcast %34 : vector<64x1xf32> to vector<64x256xf32>
    %36 = vector.broadcast %1 : vector<1x256xf32> to vector<64x256xf32>
    %37 = arith.mulf %35, %36 : vector<64x256xf32>
    %38 = arith.addf %33, %37 : vector<64x256xf32>
    %c0_25 = arith.constant 0 : index
    %c0_26 = arith.constant 0 : index
    %39 = vector.load %arg9[%c0_25, %c0_26] : memref<64x1xf32, #tpu.memory_space<vmem>>, vector<64x1xf32>
    %40 = vector.broadcast %39 : vector<64x1xf32> to vector<64x256xf32>
    %41 = arith.addf %38, %40 : vector<64x256xf32>
    %cst_27 = arith.constant 0.000000e+00 : f32
    %42 = vector.broadcast %cst_27 : f32 to vector<64x256xf32>
    %43 = arith.maximumf %41, %42 : vector<64x256xf32>
    %c0_28 = arith.constant 0 : index
    %c0_29 = arith.constant 0 : index
    %44 = vector.load %arg10[%c0_28, %c0_29] : memref<128x64xf32, #tpu.memory_space<vmem>>, vector<128x64xf32>
    %cst_30 = arith.constant dense<0.000000e+00> : vector<128x256xf32>
    %45 = tpu.matmul %44, %43, %cst_30 {dimension_numbers = #tpu.dot_dimension_numbers<[1], [0], [0], [1], [0, 0, 1, 1], [], []>} : vector<128x64xf32>, vector<64x256xf32>, vector<128x256xf32> -> vector<128x256xf32>
    %c0_31 = arith.constant 0 : index
    %c0_32 = arith.constant 0 : index
    %46 = vector.load %arg11[%c0_31, %c0_32] : memref<128x1xf32, #tpu.memory_space<vmem>>, vector<128x1xf32>
    %47 = vector.broadcast %46 : vector<128x1xf32> to vector<128x256xf32>
    %48 = arith.addf %45, %47 : vector<128x256xf32>
    %cst_33 = arith.constant 0.000000e+00 : f32
    %49 = vector.broadcast %cst_33 : f32 to vector<128x256xf32>
    %50 = arith.maximumf %48, %49 : vector<128x256xf32>
    %c0_34 = arith.constant 0 : index
    %c0_35 = arith.constant 0 : index
    %51 = vector.load %arg12[%c0_34, %c0_35] : memref<16x128xf32, #tpu.memory_space<vmem>>, vector<16x128xf32>
    %cst_36 = arith.constant dense<0.000000e+00> : vector<16x256xf32>
    %52 = tpu.matmul %51, %50, %cst_36 {dimension_numbers = #tpu.dot_dimension_numbers<[1], [0], [0], [1], [0, 0, 1, 1], [], []>} : vector<16x128xf32>, vector<128x256xf32>, vector<16x256xf32> -> vector<16x256xf32>
    %c0_37 = arith.constant 0 : index
    %c0_38 = arith.constant 0 : index
    %53 = vector.load %arg13[%c0_37, %c0_38] : memref<16x1xf32, #tpu.memory_space<vmem>>, vector<16x1xf32>
    %54 = vector.broadcast %53 : vector<16x1xf32> to vector<16x256xf32>
    %55 = arith.addf %52, %54 : vector<16x256xf32>
    %56 = arith.truncf %55 : vector<16x256xf32> to vector<16x256xbf16>
    %c0_39 = arith.constant 0 : index
    %c0_40 = arith.constant 0 : index
    %57 = vector.load %arg15[%c0_39, %c0_40] : memref<16x256xbf16, #tpu.memory_space<vmem>>, vector<16x256xbf16>
    tpu.vector_store %arg15[%c0_39, %c0_40], %56 {strides = array<i32>} : memref<16x256xbf16, #tpu.memory_space<vmem>>, vector<16x256xbf16>,
    return
  }
  func.func @transform_0(%arg0: i32) -> (i32, i32) {
    %c0_i32 = arith.constant 0 : i32
    %c0_i32_0 = arith.constant 0 : i32
    return %c0_i32, %arg0 : i32, i32
  }
  func.func @transform_1(%arg0: i32) -> (i32, i32) {
    %c0_i32 = arith.constant 0 : i32
    %c0_i32_0 = arith.constant 0 : i32
    %c0_i32_1 = arith.constant 0 : i32
    return %c0_i32, %c0_i32_0 : i32, i32
  }
  func.func @transform_2(%arg0: i32) -> (i32, i32) {
    %c0_i32 = arith.constant 0 : i32
    %c0_i32_0 = arith.constant 0 : i32
    %c0_i32_1 = arith.constant 0 : i32
    return %c0_i32, %c0_i32_0 : i32, i32
  }
  func.func @transform_3(%arg0: i32) -> (i32, i32) {
    %c0_i32 = arith.constant 0 : i32
    %c0_i32_0 = arith.constant 0 : i32
    %c0_i32_1 = arith.constant 0 : i32
    return %c0_i32, %c0_i32_0 : i32, i32
  }
  func.func @transform_4(%arg0: i32) -> (i32, i32) {
    %c0_i32 = arith.constant 0 : i32
    %c0_i32_0 = arith.constant 0 : i32
    %c0_i32_1 = arith.constant 0 : i32
    return %c0_i32, %c0_i32_0 : i32, i32
  }
  func.func @transform_5(%arg0: i32) -> (i32, i32) {
    %c0_i32 = arith.constant 0 : i32
    %c0_i32_0 = arith.constant 0 : i32
    %c0_i32_1 = arith.constant 0 : i32
    return %c0_i32, %c0_i32_0 : i32, i32
  }
  func.func @transform_6(%arg0: i32) -> (i32, i32) {
    %c0_i32 = arith.constant 0 : i32
    %c0_i32_0 = arith.constant 0 : i32
    %c0_i32_1 = arith.constant 0 : i32
    return %c0_i32, %c0_i32_0 : i32, i32
  }
  func.func @transform_7(%arg0: i32) -> (i32, i32) {
    %c0_i32 = arith.constant 0 : i32
    %c0_i32_0 = arith.constant 0 : i32
    %c0_i32_1 = arith.constant 0 : i32
    return %c0_i32, %c0_i32_0 : i32, i32
  }
  func.func @transform_8(%arg0: i32) -> (i32, i32) {
    %c0_i32 = arith.constant 0 : i32
    %c0_i32_0 = arith.constant 0 : i32
    %c0_i32_1 = arith.constant 0 : i32
    return %c0_i32, %c0_i32_0 : i32, i32
  }
  func.func @transform_9(%arg0: i32) -> (i32, i32) {
    %c0_i32 = arith.constant 0 : i32
    %c0_i32_0 = arith.constant 0 : i32
    %c0_i32_1 = arith.constant 0 : i32
    return %c0_i32, %c0_i32_0 : i32, i32
  }
  func.func @transform_10(%arg0: i32) -> (i32, i32) {
    %c0_i32 = arith.constant 0 : i32
    %c0_i32_0 = arith.constant 0 : i32
    %c0_i32_1 = arith.constant 0 : i32
    return %c0_i32, %c0_i32_0 : i32, i32
  }
  func.func @transform_11(%arg0: i32) -> (i32, i32) {
    %c0_i32 = arith.constant 0 : i32
    %c0_i32_0 = arith.constant 0 : i32
    %c0_i32_1 = arith.constant 0 : i32
    return %c0_i32, %c0_i32_0 : i32, i32
  }
  func.func @transform_12(%arg0: i32) -> (i32, i32) {
    %c0_i32 = arith.constant 0 : i32
    %c0_i32_0 = arith.constant 0 : i32
    %c0_i32_1 = arith.constant 0 : i32
    return %c0_i32, %c0_i32_0 : i32, i32
  }
  func.func @transform_13(%arg0: i32) -> (i32, i32) {
    %c0_i32 = arith.constant 0 : i32
    %c0_i32_0 = arith.constant 0 : i32
    return %c0_i32, %arg0 : i32, i32
  }
  func.func @transform_14(%arg0: i32) -> (i32, i32) {
    %c0_i32 = arith.constant 0 : i32
    %c0_i32_0 = arith.constant 0 : i32
    return %c0_i32, %arg0 : i32, i32
  }
}

</mosaic_0001>

<bundles_post_ra>
// kernel: tpu_custom_call.1
= control target key start
LH: loop header
LB: loop body
LE: loop exit
PB: predicated region body
PF: predicated region fallthrough
CT: control target
= control target key end

     0   :  { %20 = vsyncpa [#allocation3], 0  ;;  %s2801_s0 = inlined_call_operand.hbm [shape: f32[2,256], index: 0, kind: input, shape index: {}]   ;;  %s2802_s1 = inlined_call_operand.hbm [shape: f32[64,2], index: 1, kind: input, shape index: {}]   ;;  %s2803_s2 = inlined_call_operand.hbm [shape: f32[64,1], index: 2, kind: input, shape index: {}]   ;;  %s2804_s3 = inlined_call_operand.hbm [shape: f32[128,64], index: 3, kind: input, shape index: {}]   ;;  %s2805_s4 = inlined_call_operand.hbm [shape: f32[128,1], index: 4, kind: input, shape index: {}]   ;;  %s2806_s5 = inlined_call_operand.hbm [shape: f32[16,128], index: 5, kind: input, shape index: {}]   ;;  %s2807_s6 = inlined_call_operand.hbm [shape: f32[16,1], index: 6, kind: input, shape index: {}]   ;;  %s2808_s7 = inlined_call_operand.hbm [shape: f32[64,2], index: 7, kind: input, shape index: {}]   ;;  %s2809_s8 = inlined_call_operand.hbm [shape: f32[64,1], index: 8, kind: input, shape index: {}]   ;;  %s2810_s9 = inlined_call_operand.hbm [shape: f32[128,64], index: 9, kind: input, shape index: {}]   ;;  %s2811_s10 = inlined_call_operand.hbm [shape: f32[128,1], index: 10, kind: input, shape index: {}]   ;;  %s2812_s11 = inlined_call_operand.hbm [shape: f32[16,128], index: 11, kind: input, shape index: {}]   ;;  %s2813_s12 = inlined_call_operand.hbm [shape: f32[16,1], index: 12, kind: input, shape index: {}]   ;;  %s2814_s13 = inlined_call_operand.hbm [shape: bf16[16,256], index: 13, kind: output, shape index: {0}]   ;;  %s2815_s14 = inlined_call_operand.hbm [shape: bf16[16,256], index: 14, kind: output, shape index: {1}]  }
   0x1   :  { %21 = vsyncpa [#allocation6], 0 }
   0x2   :  { %22 = vsyncpa [#allocation9], 0 }
   0x3   :  { %23 = vsyncpa [#allocation12], 0 }
   0x4   :  { %24 = vsyncpa [#allocation15], 0 }
   0x5   :  { %25 = vsyncpa [#allocation18], 0 }
   0x6   :  { %26 = vsyncpa [#allocation21], 0 }
   0x7   :  { %27 = vsyncpa [#allocation4], 0 }
   0x8   :  { %28 = vsyncpa [#allocation25], 0  ;;  %s2143_s29 = smov [#allocation5]   ;;  %s1795_s17 = scalar_lea.hbm %s2802_s1, 1024 }
   0x9   :  { %s44_s30 = sshll.u32 %s2143_s29, 4  ;;  %p1796_p0 = scmp.ne.s32.totalorder %s2802_s1, %s1795_s17  ;;  %s45_s30 = int_to_ptr.vmem [resolvable:$true] %s44_s30 }
   0xa   :  { %p1799_p1 = scmp.lt.u32.totalorder %s1795_s17, %s2802_s1 }
   0xc   :  { %p1801_p2 = pnand %p1799_p1, %p1796_p0 }
   0xe   :  { %1804 = shalt.err (!%p1801_p2)
}
   0xf   :  { %s1805_s22 = scalar_lea.vmem %s45_s30, 1024  ;;  %p1810_p4 = scmp.lt.s32.totalorder %s45_s30, %s45_s30 }
  0x10   :  { %p1806_p3 = scmp.ne.s32.totalorder %s45_s30, %s1805_s22  ;;  %p1811_p5 = scmp.lt.s32.totalorder %s1805_s22, %s1805_s22 }
  0x12   :  { %p1812_p6 = por %p1811_p5, %p1810_p4 }
  0x14   :  { %p1813_p7 = pnand %p1812_p6, %p1806_p3 }
  0x16   :  { %1816 = shalt.err (!%p1813_p7)
}
  0x17   :  { %s2144_s23 = smov 128   ;;  %s2145_s24 = smov 8  }
  0x18   :  { %50 = dma.hbm_to_vmem [thread:$0]  %s2802_s1, 1024, %s45_s30, [#allocation6], %s2144_s23, %s2144_s23, %s2145_s24  }
  0x19   :  { %s2146_s27 = smov [#allocation8]   ;;  %s2147_s29 = smov [#allocation11]  }
  0x1a   :  { %s68_s28 = sshll.u32 %s2146_s27, 4  ;;  %s92_s15 = sshll.u32 %s2147_s29, 4  ;;  %s69_s28 = int_to_ptr.vmem [resolvable:$true] %s68_s28  ;;  %s93_s15 = int_to_ptr.vmem [resolvable:$true] %s92_s15 }
  0x1b   :  { %s1817_s18 = scalar_lea.hbm %s2804_s3, 2048 }
  0x1c   :  { %p1818_p8 = scmp.ne.s32.totalorder %s2804_s3, %s1817_s18  ;;  %p1821_p9 = scmp.lt.u32.totalorder %s1817_s18, %s2804_s3 }
  0x1e   :  { %p1823_p10 = pnand %p1821_p9, %p1818_p8 }
  0x20   :  { %1826 = shalt.err (!%p1823_p10)
}
  0x21   :  { %s1827_s1 = scalar_lea.vmem %s69_s28, 2048  ;;  %p1832_p12 = scmp.lt.s32.totalorder %s69_s28, %s69_s28 }
  0x22   :  { %p1828_p11 = scmp.ne.s32.totalorder %s69_s28, %s1827_s1  ;;  %p1833_p13 = scmp.lt.s32.totalorder %s1827_s1, %s1827_s1 }
  0x24   :  { %p1834_p0 = por %p1833_p13, %p1832_p12 }
  0x26   :  { %p1835_p1 = pnand %p1834_p0, %p1828_p11 }
  0x28   :  { %1838 = shalt.err (!%p1835_p1)
}
  0x29   :  { %74 = dma.hbm_to_vmem [thread:$0]  %s2804_s3, 2048, %s69_s28, [#allocation9], %s2144_s23, %s2144_s23, %s2145_s24  }
  0x2a   :  { %s1839_s29 = scalar_lea.hbm %s2806_s5, 256 }
  0x2b   :  { %p1840_p2 = scmp.ne.s32.totalorder %s2806_s5, %s1839_s29  ;;  %p1843_p3 = scmp.lt.u32.totalorder %s1839_s29, %s2806_s5 }
  0x2d   :  { %p1845_p4 = pnand %p1843_p3, %p1840_p2 }
  0x2f   :  { %1848 = shalt.err (!%p1845_p4)
}
  0x30   :  { %s1849_s20 = scalar_lea.vmem %s93_s15, 256  ;;  %p1854_p6 = scmp.lt.s32.totalorder %s93_s15, %s93_s15 }
  0x31   :  { %p1850_p5 = scmp.ne.s32.totalorder %s93_s15, %s1849_s20  ;;  %p1855_p7 = scmp.lt.s32.totalorder %s1849_s20, %s1849_s20 }
  0x33   :  { %p1856_p8 = por %p1855_p7, %p1854_p6 }
  0x35   :  { %p1857_p9 = pnand %p1856_p8, %p1850_p5 }
  0x37   :  { %1860 = shalt.err (!%p1857_p9)
}
  0x38   :  { %98 = dma.hbm_to_vmem [thread:$0]  %s2806_s5, 256, %s93_s15, [#allocation12], %s2144_s23, %s2144_s23, %s2145_s24  }
  0x39   :  { %s2148_s21 = smov [#allocation14]   ;;  %s2149_s1 = smov [#allocation17]  }
  0x3a   :  { %s116_s22 = sshll.u32 %s2148_s21, 4  ;;  %s140_s30 = sshll.u32 %s2149_s1, 4  ;;  %s117_s22 = int_to_ptr.vmem [resolvable:$true] %s116_s22  ;;  %s141_s30 = int_to_ptr.vmem [resolvable:$true] %s140_s30 }
  0x3b   :  { %s1861_s27 = scalar_lea.hbm %s2808_s7, 1024 }
  0x3c   :  { %p1862_p10 = scmp.ne.s32.totalorder %s2808_s7, %s1861_s27  ;;  %p1865_p11 = scmp.lt.u32.totalorder %s1861_s27, %s2808_s7 }
  0x3e   :  { %p1867_p12 = pnand %p1865_p11, %p1862_p10 }
  0x40   :  { %1870 = shalt.err (!%p1867_p12)
}
  0x41   :  { %s1871_s5 = scalar_lea.vmem %s117_s22, 1024  ;;  %p1876_p0 = scmp.lt.s32.totalorder %s117_s22, %s117_s22 }
  0x42   :  { %p1872_p13 = scmp.ne.s32.totalorder %s117_s22, %s1871_s5  ;;  %p1877_p1 = scmp.lt.s32.totalorder %s1871_s5, %s1871_s5 }
  0x44   :  { %p1878_p2 = por %p1877_p1, %p1876_p0 }
  0x46   :  { %p1879_p3 = pnand %p1878_p2, %p1872_p13 }
  0x48   :  { %1882 = shalt.err (!%p1879_p3)
}
  0x49   :  { %122 = dma.hbm_to_vmem [thread:$0]  %s2808_s7, 1024, %s117_s22, [#allocation15], %s2144_s23, %s2144_s23, %s2145_s24  }
  0x4a   :  { %s1883_s28 = scalar_lea.hbm %s2810_s9, 2048 }
  0x4b   :  { %p1884_p4 = scmp.ne.s32.totalorder %s2810_s9, %s1883_s28  ;;  %p1887_p5 = scmp.lt.u32.totalorder %s1883_s28, %s2810_s9 }
  0x4d   :  { %p1889_p6 = pnand %p1887_p5, %p1884_p4 }
  0x4f   :  { %1892 = shalt.err (!%p1889_p6)
}
  0x50   :  { %s1893_s27 = scalar_lea.vmem %s141_s30, 2048  ;;  %p1898_p8 = scmp.lt.s32.totalorder %s141_s30, %s141_s30 }
  0x51   :  { %p1894_p7 = scmp.ne.s32.totalorder %s141_s30, %s1893_s27  ;;  %p1899_p9 = scmp.lt.s32.totalorder %s1893_s27, %s1893_s27 }
  0x53   :  { %p1900_p10 = por %p1899_p9, %p1898_p8 }
  0x55   :  { %p1901_p11 = pnand %p1900_p10, %p1894_p7 }
  0x57   :  { %1904 = shalt.err (!%p1901_p11)
}
  0x58   :  { %146 = dma.hbm_to_vmem [thread:$0]  %s2810_s9, 2048, %s141_s30, [#allocation18], %s2144_s23, %s2144_s23, %s2145_s24  }
  0x59   :  { %s2150_s29 = smov [#allocation20]   ;;  %s2151_s17 = smov [#allocation2]  }
  0x5a   :  { %s164_s16 = sshll.u32 %s2150_s29, 4  ;;  %s35_s18 = sshll.u32 %s2151_s17, 4  ;;  %s165_s16 = int_to_ptr.vmem [resolvable:$true] %s164_s16  ;;  %s36_s18 = int_to_ptr.vmem [resolvable:$true] %s35_s18 }
  0x5b   :  { %s1905_s19 = scalar_lea.hbm %s2812_s11, 256 }
  0x5c   :  { %p1906_p12 = scmp.ne.s32.totalorder %s2812_s11, %s1905_s19  ;;  %p1909_p13 = scmp.lt.u32.totalorder %s1905_s19, %s2812_s11 }
  0x5e   :  { %p1911_p0 = pnand %p1909_p13, %p1906_p12 }
  0x60   :  { %1914 = shalt.err (!%p1911_p0)
}
  0x61   :  { %s1915_s9 = scalar_lea.vmem %s165_s16, 256  ;;  %p1920_p2 = scmp.lt.s32.totalorder %s165_s16, %s165_s16 }
  0x62   :  { %p1916_p1 = scmp.ne.s32.totalorder %s165_s16, %s1915_s9  ;;  %p1921_p3 = scmp.lt.s32.totalorder %s1915_s9, %s1915_s9 }
  0x64   :  { %p1922_p4 = por %p1921_p3, %p1920_p2 }
  0x66   :  { %p1923_p5 = pnand %p1922_p4, %p1916_p1 }
  0x68   :  { %1926 = shalt.err (!%p1923_p5)
}
  0x69   :  { %170 = dma.hbm_to_vmem [thread:$0]  %s2812_s11, 256, %s165_s16, [#allocation21], %s2144_s23, %s2144_s23, %s2145_s24  }
  0x6a   :  { %s1927_s27 = scalar_lea.hbm %s2801_s0, 64 }
  0x6b   :  { %p1928_p6 = scmp.ne.s32.totalorder %s2801_s0, %s1927_s27  ;;  %p1931_p7 = scmp.lt.u32.totalorder %s1927_s27, %s2801_s0 }
  0x6d   :  { %p1933_p8 = pnand %p1931_p7, %p1928_p6 }
  0x6f   :  { %1936 = shalt.err (!%p1933_p8)
}
  0x70   :  { %s1937_s5 = scalar_lea.vmem %s36_s18, 64  ;;  %p1942_p10 = scmp.lt.s32.totalorder %s36_s18, %s36_s18 }
  0x71   :  { %p1938_p9 = scmp.ne.s32.totalorder %s36_s18, %s1937_s5  ;;  %p1943_p11 = scmp.lt.s32.totalorder %s1937_s5, %s1937_s5 }
  0x73   :  { %p1944_p12 = por %p1943_p11, %p1942_p10 }
  0x75   :  { %p1945_p13 = pnand %p1944_p12, %p1938_p9 }
  0x77   :  { %1948 = shalt.err (!%p1945_p13)
}
  0x78   :  { %38 = dma.hbm_to_vmem [thread:$0]  %s2801_s0, 64, %s36_s18, [#allocation3]  }
  0x79   :  { %s2152_s15 = smov [#allocation7]   ;;  %s2153_s20 = smov [#allocation10]  }
  0x7a   :  { %s56_s19 = sshll.u32 %s2152_s15, 4  ;;  %s80_s3 = sshll.u32 %s2153_s20, 4  ;;  %s57_s19 = int_to_ptr.vmem [resolvable:$true] %s56_s19  ;;  %s81_s3 = int_to_ptr.vmem [resolvable:$true] %s80_s3 }
  0x7b   :  { %s1949_s9 = scalar_lea.hbm %s2803_s2, 1024 }
  0x7c   :  { %p1950_p0 = scmp.ne.s32.totalorder %s2803_s2, %s1949_s9  ;;  %p1953_p1 = scmp.lt.u32.totalorder %s1949_s9, %s2803_s2 }
  0x7e   :  { %p1955_p2 = pnand %p1953_p1, %p1950_p0 }
  0x80   :  { %1958 = shalt.err (!%p1955_p2)
}
  0x81   :  { %s1959_s0 = scalar_lea.vmem %s57_s19, 1024  ;;  %p1964_p4 = scmp.lt.s32.totalorder %s57_s19, %s57_s19 }
  0x82   :  { %p1960_p3 = scmp.ne.s32.totalorder %s57_s19, %s1959_s0  ;;  %p1965_p5 = scmp.lt.s32.totalorder %s1959_s0, %s1959_s0 }
  0x84   :  { %p1966_p6 = por %p1965_p5, %p1964_p4 }
  0x86   :  { %p1967_p7 = pnand %p1966_p6, %p1960_p3 }
  0x88   :  { %1970 = shalt.err (!%p1967_p7)
}
  0x89   :  { %62 = dma.hbm_to_vmem [thread:$0]  %s2803_s2, 1024, %s57_s19, [#allocation6], %s2144_s23, %s2144_s23, %s2145_s24  }
  0x8a   :  { %s1971_s29 = scalar_lea.hbm %s2805_s4, 2048 }
  0x8b   :  { %p1972_p8 = scmp.ne.s32.totalorder %s2805_s4, %s1971_s29  ;;  %p1975_p9 = scmp.lt.u32.totalorder %s1971_s29, %s2805_s4 }
  0x8d   :  { %p1977_p10 = pnand %p1975_p9, %p1972_p8 }
  0x8f   :  { %1980 = shalt.err (!%p1977_p10)
}
  0x90   :  { %s1981_s15 = scalar_lea.vmem %s81_s3, 2048  ;;  %p1986_p12 = scmp.lt.s32.totalorder %s81_s3, %s81_s3 }
  0x91   :  { %p1982_p11 = scmp.ne.s32.totalorder %s81_s3, %s1981_s15  ;;  %p1987_p13 = scmp.lt.s32.totalorder %s1981_s15, %s1981_s15 }
  0x93   :  { %p1988_p0 = por %p1987_p13, %p1986_p12 }
  0x95   :  { %p1989_p1 = pnand %p1988_p0, %p1982_p11 }
  0x97   :  { %1992 = shalt.err (!%p1989_p1)
}
  0x98   :  { %86 = dma.hbm_to_vmem [thread:$0]  %s2805_s4, 2048, %s81_s3, [#allocation9], %s2144_s23, %s2144_s23, %s2145_s24  }
  0x99   :  { %s2154_s20 = smov [#allocation13]   ;;  %s2155_s21 = smov [#allocation16]  }
  0x9a   :  { %s104_s28 = sshll.u32 %s2154_s20, 4  ;;  %s128_s9 = sshll.u32 %s2155_s21, 4  ;;  %s105_s28 = int_to_ptr.vmem [resolvable:$true] %s104_s28  ;;  %s129_s9 = int_to_ptr.vmem [resolvable:$true] %s128_s9 }
  0x9b   :  { %s1993_s25 = scalar_lea.hbm %s2807_s6, 256 }
  0x9c   :  { %p1994_p2 = scmp.ne.s32.totalorder %s2807_s6, %s1993_s25  ;;  %p1997_p3 = scmp.lt.u32.totalorder %s1993_s25, %s2807_s6 }
  0x9e   :  { %p1999_p4 = pnand %p1997_p3, %p1994_p2 }
  0xa0   :  { %2002 = shalt.err (!%p1999_p4)
}
  0xa1   :  { %s2003_s4 = scalar_lea.vmem %s105_s28, 256  ;;  %p2008_p6 = scmp.lt.s32.totalorder %s105_s28, %s105_s28 }
  0xa2   :  { %p2004_p5 = scmp.ne.s32.totalorder %s105_s28, %s2003_s4  ;;  %p2009_p7 = scmp.lt.s32.totalorder %s2003_s4, %s2003_s4 }
  0xa4   :  { %p2010_p8 = por %p2009_p7, %p2008_p6 }
  0xa6   :  { %p2011_p9 = pnand %p2010_p8, %p2004_p5 }
  0xa8   :  { %2014 = shalt.err (!%p2011_p9)
}
  0xa9   :  { %110 = dma.hbm_to_vmem [thread:$0]  %s2807_s6, 256, %s105_s28, [#allocation12], %s2144_s23, %s2144_s23, %s2145_s24  }
  0xaa   :  { %s2015_s17 = scalar_lea.hbm %s2809_s8, 1024 }
  0xab   :  { %p2016_p10 = scmp.ne.s32.totalorder %s2809_s8, %s2015_s17  ;;  %p2019_p11 = scmp.lt.u32.totalorder %s2015_s17, %s2809_s8 }
  0xad   :  { %p2021_p12 = pnand %p2019_p11, %p2016_p10 }
  0xaf   :  { %2024 = shalt.err (!%p2021_p12)
}
  0xb0   :  { %s2025_s2 = scalar_lea.vmem %s129_s9, 1024  ;;  %p2030_p0 = scmp.lt.s32.totalorder %s129_s9, %s129_s9 }
  0xb1   :  { %p2026_p13 = scmp.ne.s32.totalorder %s129_s9, %s2025_s2  ;;  %p2031_p1 = scmp.lt.s32.totalorder %s2025_s2, %s2025_s2 }
  0xb3   :  { %p2032_p2 = por %p2031_p1, %p2030_p0 }
  0xb5   :  { %p2033_p3 = pnand %p2032_p2, %p2026_p13 }
  0xb7   :  { %2036 = shalt.err (!%p2033_p3)
}
  0xb8   :  { %134 = dma.hbm_to_vmem [thread:$0]  %s2809_s8, 1024, %s129_s9, [#allocation15], %s2144_s23, %s2144_s23, %s2145_s24  }
  0xb9   :  { %s2156_s20 = smov [#allocation19]   ;;  %s2157_s21 = smov [#allocation22]  }
  0xba   :  { %s152_s28 = sshll.u32 %s2156_s20, 4  ;;  %s176_s30 = sshll.u32 %s2157_s21, 4  ;;  %s153_s28 = int_to_ptr.vmem [resolvable:$true] %s152_s28  ;;  %s177_s30 = int_to_ptr.vmem [resolvable:$true] %s176_s30 }
  0xbb   :  { %s2037_s26 = scalar_lea.hbm %s2811_s10, 2048 }
  0xbc   :  { %p2038_p4 = scmp.ne.s32.totalorder %s2811_s10, %s2037_s26  ;;  %p2041_p5 = scmp.lt.u32.totalorder %s2037_s26, %s2811_s10 }
  0xbe   :  { %p2043_p6 = pnand %p2041_p5, %p2038_p4 }
  0xc0   :  { %2046 = shalt.err (!%p2043_p6)
}
  0xc1   :  { %s2047_s8 = scalar_lea.vmem %s153_s28, 2048  ;;  %p2052_p8 = scmp.lt.s32.totalorder %s153_s28, %s153_s28 }
  0xc2   :  { %p2048_p7 = scmp.ne.s32.totalorder %s153_s28, %s2047_s8  ;;  %p2053_p9 = scmp.lt.s32.totalorder %s2047_s8, %s2047_s8 }
  0xc4   :  { %p2054_p10 = por %p2053_p9, %p2052_p8 }
  0xc6   :  { %p2055_p11 = pnand %p2054_p10, %p2048_p7 }
  0xc8   :  { %2058 = shalt.err (!%p2055_p11)
}
  0xc9   :  { %158 = dma.hbm_to_vmem [thread:$0]  %s2811_s10, 2048, %s153_s28, [#allocation18], %s2144_s23, %s2144_s23, %s2145_s24  }
  0xca   :  { %s2059_s29 = scalar_lea.hbm %s2813_s12, 256 }
  0xcb   :  { %p2060_p12 = scmp.ne.s32.totalorder %s2813_s12, %s2059_s29  ;;  %p2063_p13 = scmp.lt.u32.totalorder %s2059_s29, %s2813_s12 }
  0xcd   :  { %p2065_p0 = pnand %p2063_p13, %p2060_p12 }
  0xcf   :  { %2068 = shalt.err (!%p2065_p0)
}
  0xd0   :  { %s2069_s15 = scalar_lea.vmem %s177_s30, 256  ;;  %p2074_p2 = scmp.lt.s32.totalorder %s177_s30, %s177_s30 }
  0xd1   :  { %p2070_p1 = scmp.ne.s32.totalorder %s177_s30, %s2069_s15  ;;  %p2075_p3 = scmp.lt.s32.totalorder %s2069_s15, %s2069_s15 }
  0xd3   :  { %p2076_p4 = por %p2075_p3, %p2074_p2 }
  0xd5   :  { %p2077_p5 = pnand %p2076_p4, %p2070_p1 }
  0xd7   :  { %2080 = shalt.err (!%p2077_p5)
}
  0xd8   :  { %182 = dma.hbm_to_vmem [thread:$0]  %s2813_s12, 256, %s177_s30, [#allocation21], %s2144_s23, %s2144_s23, %s2145_s24  }
  0xd9   :  { %2125 = dma.done.wait [#allocation3], 64  }
  0xda   :  { %2126 = vsyncadd [#allocation3], 4294967232 }
  0xdb   :  { %2127 = dma.done.wait [#allocation6], 2048  }
  0xdc   :  { %2128 = vsyncadd [#allocation6], 4294965248 }
  0xdd   :  { %2129 = dma.done.wait [#allocation9], 4096  }
  0xde   :  { %2130 = vsyncadd [#allocation9], 4294963200 }
  0xdf   :  { %2131 = dma.done.wait [#allocation12], 512  }
  0xe0   :  { %2132 = vsyncadd [#allocation12], 4294966784 }
  0xe1   :  { %2133 = dma.done.wait [#allocation15], 2048  }
  0xe2   :  { %2134 = vsyncadd [#allocation15], 4294965248 }
  0xe3   :  { %2135 = dma.done.wait [#allocation18], 4096  }
  0xe4   :  { %2136 = vsyncadd [#allocation18], 4294963200 }
  0xe5   :  { %2137 = dma.done.wait [#allocation21], 512  }
  0xe6   :  { %2138 = vsyncadd [#allocation21], 4294966784  ;;  %v2158_v0 = vmov 1   ;;  %v227_v1 = vld [vmem:[#allocation5 + $0x10] sm:$0xff]  ;;  %v225_v2 = vld [vmem:[#allocation5] sm:$0xff]  ;;  %v2159_v7 = vmov 0   ;;  %v274_v46 = vlaneseq }
  0xe7   :  { %1777 = vset.pattern.permute.xlu0 %v2158_v0  ;;  %1775 = vset.pattern.permute.xlu1 %v2158_v0  ;;  %v229_v3 = vld [vmem:[#allocation5 + $0x20] sm:$0xff]  ;;  %v226_v4 = vld [vmem:[#allocation5 + $0x8] sm:$0xff]  ;;  %v231_v5 = vld [vmem:[#allocation5 + $0x30] sm:$0xff]  ;;  %v2160_v31 = vmov 0.0   ;;  %vm567_vm0 = vcmask 523264   ;;  %s2161_s12 = smov [#allocation23]  }
  0xe8   :  { %309 = vperm.xlu0 %1777, %v227_v1   ;;  %301 = vperm.xlu1 %1775, %v225_v2   ;;  %v228_v6 = vld [vmem:[#allocation5 + $0x18] sm:$0xff]  ;;  %v375_v8 = vld [vmem:[#allocation7] sm:$0xff]  ;;  %v376_v9 = vld [vmem:[#allocation7 + $0x8] sm:$0xff]  ;;  %v275_v50 = vshrl.u32 %v274_v46, 7  ;;  %s1585_s6 = sshll.u32 %s2161_s12, 4  ;;  %s1586_s6 = int_to_ptr.vmem [resolvable:$true] %s1585_s6 }
  0xe9   :  { %v230_v10 = vld [vmem:[#allocation5 + $0x28] sm:$0xff]  ;;  %v378_v11 = vld [vmem:[#allocation7 + $0x18] sm:$0xff]  ;;  %v377_v13 = vld [vmem:[#allocation7 + $0x10] sm:$0xff]  ;;  %680 = vmatprep.mubr.f32.mxu0 %v2160_v31  ;;  %887 = vmatprep.mubr.f32.mxu1 %v2160_v31  ;;  %s2081_s19 = scalar_lea.vmem %s1586_s6, 256  ;;  %p2086_p7 = scmp.lt.s32.totalorder %s1586_s6, %s1586_s6 }
  0xea   :  { %v380_v12 = vld [vmem:[#allocation7 + $0x28] sm:$0xff]  ;;  %v914_v14 = vld [vmem:[#allocation14] sm:$0xff]  ;;  %v232_v16 = vld [vmem:[#allocation5 + $0x38] sm:$0xff]  ;;  %v276_v55 = vsub.s32 0, %v275_v50  ;;  %v280_v56 = vsub.s32 1, %v275_v50  ;;  %p2082_p6 = scmp.ne.s32.totalorder %s1586_s6, %s2081_s19  ;;  %p2087_p8 = scmp.lt.s32.totalorder %s2081_s19, %s2081_s19 }
  0xeb   :  { %v918_v15 = vld [vmem:[#allocation14 + $0x20] sm:$0xff]  ;;  %v2439_v17 = vld [vmem:[#allocation14 + $0x30] sm:$0xff]  ;;  %v382_v23 = vld [vmem:[#allocation7 + $0x38] sm:$0xff] }
  0xec   :  { %317 = vperm.xlu0 %1777, %v229_v3   ;;  %305 = vperm.xlu1 %1775, %v226_v4   ;;  %v471_v18 = vld [vmem:[#allocation10] sm:$0xff]  ;;  %v473_v20 = vld [vmem:[#allocation10 + $0x10] sm:$0xff]  ;;  %v472_v25 = vld [vmem:[#allocation10 + $0x8] sm:$0xff]  ;;  %p2088_p9 = por %p2087_p8, %p2086_p7 }
  0xed   :  { %v379_v19 = vld [vmem:[#allocation7 + $0x20] sm:$0xff]  ;;  %v381_v21 = vld [vmem:[#allocation7 + $0x30] sm:$0xff]  ;;  %v474_v27 = vld [vmem:[#allocation10 + $0x18] sm:$0xff] }
  0xee   :  { %v475_v22 = vld [vmem:[#allocation10 + $0x20] sm:$0xff]  ;;  %v477_v24 = vld [vmem:[#allocation10 + $0x30] sm:$0xff]  ;;  %v476_v29 = vld [vmem:[#allocation10 + $0x28] sm:$0xff]  ;;  %p2089_p10 = pnand %p2088_p9, %p2082_p6 }
  0xef   :  { %v479_v26 = vld [vmem:[#allocation10 + $0x40] sm:$0xff]  ;;  %v481_v28 = vld [vmem:[#allocation10 + $0x50] sm:$0xff]  ;;  %v478_v32 = vld [vmem:[#allocation10 + $0x38] sm:$0xff] }
  0xf0   :  { %325 = vperm.xlu0 %1777, %v231_v5   ;;  %1776 = vset.pattern.permute.xlu1 %v2159_v7  ;;  %v483_v30 = vld [vmem:[#allocation10 + $0x60] sm:$0xff]  ;;  %v485_v33 = vld [vmem:[#allocation10 + $0x70] sm:$0xff]  ;;  %v480_v34 = vld [vmem:[#allocation10 + $0x48] sm:$0xff] }
  0xf1   :  { %250 = vperm.xlu1 %1776, %v228_v6   ;;  %v482_v35 = vld [vmem:[#allocation10 + $0x58] sm:$0xff]  ;;  %v484_v37 = vld [vmem:[#allocation10 + $0x68] sm:$0xff]  ;;  %v1042_v38 = vld [vmem:[#allocation16] sm:$0xff] }
  0xf2   :  { %v917_v36 = vld [vmem:[#allocation14 + $0x18] sm:$0xff]  ;;  %v915_v40 = vld [vmem:[#allocation14 + $0x8] sm:$0xff]  ;;  %v916_v41 = vld [vmem:[#allocation14 + $0x10] sm:$0xff] }
  0xf3   :  { %v486_v39 = vld [vmem:[#allocation10 + $0x78] sm:$0xff]  ;;  %v1043_v42 = vld [vmem:[#allocation16 + $0x8] sm:$0xff]  ;;  %v1044_v54 = vld [vmem:[#allocation16 + $0x10] sm:$0xff] }
  0xf4   :  { %1782 = vset.pattern.permute.xlu0 %v2159_v7  ;;  %v919_v45 = vld [vmem:[#allocation14 + $0x28] sm:$0xff]  ;;  %v1045_v49 = vld [vmem:[#allocation16 + $0x18] sm:$0xff]  ;;  %v1138_v57 = vld [vmem:[#allocation19] sm:$0xff] }
  0xf5   :  { %235 = vperm.xlu0 %1782, %v225_v2   ;;  %1778 = vset.pattern.permute.xlu1 %v2158_v0  ;;  %v1047_v52 = vld [vmem:[#allocation16 + $0x28] sm:$0xff]  ;;  %v224_v58 = vld [vmem:[#allocation2 + $0x1] ss:$2 sm:$0x3] }
  0xf6   :  { %313 = vperm.xlu1 %1778, %v228_v6   ;;  %v222_v59 = vld [vmem:[#allocation2] ss:$2 sm:$0x3]  ;;  %v2461_v62 = vrot.slane %v224_v58, %v276_v55  ;;  %v2463_v63 = vrot.slane %v224_v58, %v280_v56 }
  0xf7   :  { %v2467_v2 = vrot.slane %v222_v59, %v280_v56 }
  0xf9   :  { %240 = vperm.xlu0 %1782, %v226_v4  }
  0xfa   :  { %1779 = vset.pattern.permute.xlu1 %v2159_v7 }
  0xfb   :  { %385 = vperm.xlu1 %1779, %v375_v8  }
  0xfd   :  { %245 = vperm.xlu0 %1782, %v227_v1   ;;  %v2465_v1 = vrot.slane %v222_v59, %v276_v55  ;;  %v1049_v59 = vld [vmem:[#allocation16 + $0x38] sm:$0xff] }
  0xff   :  { %255 = vperm.xlu1 %1779, %v229_v3   ;;  %v1140_v3 = vld [vmem:[#allocation19 + $0x10] sm:$0xff] }
 0x101   :  { %390 = vperm.xlu0 %1782, %v376_v9   ;;  %v921_v9 = vld [vmem:[#allocation14 + $0x38] sm:$0xff] }
 0x103   :  { %260 = vperm.xlu1 %1779, %v230_v10  }
 0x105   :  { %400 = vperm.xlu0 %1782, %v378_v11  }
 0x107   :  { %1780 = vset.pattern.permute.xlu1 %v2158_v0 }
 0x108   :  { %321 = vperm.xlu1 %1780, %v230_v10  }
 0x109   :  { %410 = vperm.xlu0 %1782, %v380_v12  }
 0x10c   :  { %1781 = vset.pattern.permute.xlu1 %v2159_v7 }
 0x10d   :  { %395 = vperm.xlu1 %1781, %v377_v13   ;;  %1785 = vset.pattern.permute.xlu0 %v2158_v0 }
 0x10e   :  { %979 = vperm.xlu0 %1785, %v914_v14  }
 0x111   :  { %265 = vperm.xlu1 %1781, %v231_v5  }
 0x112   :  { %995 = vperm.xlu0 %1785, %v918_v15  }
 0x115   :  { %270 = vperm.xlu1 %1781, %v232_v16  }
 0x116   :  { %1003 = vperm.xlu0 %1785, %v2439_v17  }
 0x119   :  { %1783 = vset.pattern.permute.xlu1 %v2158_v0 }
 0x11a   :  { %329 = vperm.xlu1 %1783, %v232_v16   ;;  %1792 = vset.pattern.permute.xlu0 %v2159_v7 }
 0x11b   :  { %489 = vperm.xlu0 %1792, %v471_v18  }
 0x11e   :  { %1784 = vset.pattern.permute.xlu1 %v2159_v7 }
 0x11f   :  { %405 = vperm.xlu1 %1784, %v379_v19   ;;  %499 = vperm.xlu0 %1792, %v473_v20  }
 0x123   :  { %415 = vperm.xlu1 %1784, %v381_v21   ;;  %509 = vperm.xlu0 %1792, %v475_v22  }
 0x127   :  { %420 = vperm.xlu1 %1784, %v382_v23   ;;  %519 = vperm.xlu0 %1792, %v477_v24  }
 0x12b   :  { %494 = vperm.xlu1 %1784, %v472_v25   ;;  %529 = vperm.xlu0 %1792, %v479_v26   ;;  %v1144_v25 = vld [vmem:[#allocation19 + $0x30] sm:$0xff] }
 0x12f   :  { %504 = vperm.xlu1 %1784, %v474_v27   ;;  %539 = vperm.xlu0 %1792, %v481_v28  }
 0x133   :  { %514 = vperm.xlu1 %1784, %v476_v29   ;;  %549 = vperm.xlu0 %1792, %v483_v30  }
 0x137   :  { %524 = vperm.xlu1 %1784, %v478_v32   ;;  %559 = vperm.xlu0 %1792, %v485_v33  }
 0x13b   :  { %534 = vperm.xlu1 %1784, %v480_v34   ;;  %924 = vperm.xlu0 %1792, %v914_v14   ;;  %v1142_v14 = vld [vmem:[#allocation19 + $0x20] sm:$0xff] }
 0x13f   :  { %544 = vperm.xlu1 %1784, %v482_v35   ;;  %939 = vperm.xlu0 %1792, %v917_v36   ;;  %v1146_v35 = vld [vmem:[#allocation19 + $0x40] sm:$0xff] }
 0x143   :  { %554 = vperm.xlu1 %1784, %v484_v37   ;;  %1052 = vperm.xlu0 %1792, %v1042_v38  }
 0x147   :  { %564 = vperm.xlu1 %1784, %v486_v39   ;;  %944 = vperm.xlu0 %1792, %v918_v15  }
 0x14b   :  { %929 = vperm.xlu1 %1784, %v915_v40   ;;  %1067 = vperm.xlu0 %1792, %v1045_v49   ;;  %v1148_v49 = vld [vmem:[#allocation19 + $0x50] sm:$0xff] }
 0x14f   :  { %1786 = vset.pattern.permute.xlu1 %v2158_v0  ;;  %1077 = vperm.xlu0 %1792, %v1047_v52  }
 0x150   :  { %983 = vperm.xlu1 %1786, %v915_v40  }
 0x153   :  { %1156 = vperm.xlu0 %1792, %v1138_v57  }
 0x154   :  { %1787 = vset.pattern.permute.xlu1 %v2159_v7 }
 0x155   :  { %934 = vperm.xlu1 %1787, %v916_v41  }
 0x157   :  { %1166 = vperm.xlu0 %1792, %v1140_v3  }
 0x159   :  { %1788 = vset.pattern.permute.xlu1 %v2158_v0 }
 0x15a   :  { %987 = vperm.xlu1 %1788, %v916_v41  }
 0x15b   :  { %1176 = vperm.xlu0 %1792, %v1142_v14  }
 0x15e   :  { %991 = vperm.xlu1 %1788, %v917_v36   ;;  %v1046_v36 = vld [vmem:[#allocation16 + $0x20] sm:$0xff] }
 0x15f   :  { %1186 = vperm.xlu0 %1792, %v1144_v25  }
 0x162   :  { %1789 = vset.pattern.permute.xlu1 %v2159_v7 }
 0x163   :  { %1057 = vperm.xlu1 %1789, %v1043_v42   ;;  %1196 = vperm.xlu0 %1792, %v1146_v35  }
 0x167   :  { %v302_v43 = vpop.permute.xlu1 %301  ;;  %v2451_v44 = vpop.permute.xlu0 %309  ;;  %949 = vperm.xlu1 %1789, %v919_v45   ;;  %1206 = vperm.xlu0 %1792, %v1148_v49  }
 0x168   :  { %v343_v10 = vmul.f32 %v2461_v62, %v302_v43  ;;  %v344_v11 = vmul.f32 %v2463_v63, %v302_v43  ;;  %v347_v41 = vmul.f32 %v2461_v62, %v2451_v44 }
 0x16b   :  { %v306_v47 = vpop.permute.xlu1 %305  ;;  %v2453_v48 = vpop.permute.xlu0 %317  ;;  %1790 = vset.pattern.permute.xlu1 %v2158_v0 }
 0x16c   :  { %999 = vperm.xlu1 %1790, %v919_v45   ;;  %v345_v16 = vmul.f32 %v2461_v62, %v306_v47  ;;  %v346_v18 = vmul.f32 %v2463_v63, %v306_v47  ;;  %v351_v25 = vmul.f32 %v2461_v62, %v2453_v48 }
 0x16f   :  { %v2455_v51 = vpop.permute.xlu0 %325 }
 0x170   :  { %v2458_v53 = vpop.permute.xlu1 %250  ;;  %1791 = vset.pattern.permute.xlu1 %v2159_v7 }
 0x171   :  { %1062 = vperm.xlu1 %1791, %v1044_v54   ;;  %v290_v42 = vmul.f32 %v2465_v1, %v2458_v53  ;;  %v291_v43 = vmul.f32 %v2467_v2, %v2458_v53  ;;  %v1150_v53 = vld [vmem:[#allocation19 + $0x60] sm:$0xff] }
 0x172   :  { %1216 = vperm.xlu0 %1792, %v1150_v53  }
 0x174   :  { %v236_v60 = vpop.permute.xlu0 %235 }
 0x175   :  { %v314_v61 = vpop.permute.xlu1 %313  ;;  %v284_v5 = vmul.f32 %v2465_v1, %v236_v60  ;;  %v285_v6 = vmul.f32 %v2467_v2, %v236_v60  ;;  %954 = vperm.xlu1 %1791, %v2439_v17  }
 0x176   :  { %v349_v37 = vmul.f32 %v2461_v62, %v314_v61  ;;  %v350_v38 = vmul.f32 %v2463_v63, %v314_v61 }
 0x177   :  { %v359_v19 = vadd.f32 %v343_v10, %v284_v5  ;;  %v360_v20 = vadd.f32 %v344_v11, %v285_v6  ;;  %v1139_v10 = vld [vmem:[#allocation19 + $0x8] sm:$0xff] }
 0x178   :  { %v241_v4 = vpop.permute.xlu0 %240  ;;  %v365_v52 = vadd.f32 %v349_v37, %v290_v42  ;;  %v366_v54 = vadd.f32 %v350_v38, %v291_v43  ;;  %v1147_v43 = vld [vmem:[#allocation19 + $0x48] sm:$0xff] }
 0x179   :  { %v286_v12 = vmul.f32 %v2465_v1, %v241_v4  ;;  %v287_v13 = vmul.f32 %v2467_v2, %v241_v4  ;;  %959 = vperm.xlu1 %1791, %v921_v9  }
 0x17a   :  { %v386_v8 = vpop.permute.xlu1 %385 }
 0x17b   :  { %v423_v21 = vadd.f32 %v386_v8, %v359_v19  ;;  %v424_v22 = vadd.f32 %v386_v8, %v360_v20  ;;  %v361_v23 = vadd.f32 %v345_v16, %v286_v12  ;;  %v362_v24 = vadd.f32 %v346_v18, %v287_v13  ;;  %v1152_v8 = vld [vmem:[#allocation19 + $0x70] sm:$0xff]  ;;  %v1141_v18 = vld [vmem:[#allocation19 + $0x18] sm:$0xff] }
 0x17c   :  { %v246_v15 = vpop.permute.xlu0 %245  ;;  %1226 = vperm.xlu0 %1792, %v1152_v8   ;;  %v811_v13 = vld [vmem:[#allocation13] sm:$0xff] }
 0x17d   :  { %1793 = vset.pattern.permute.xlu1 %v2158_v0  ;;  %v439_v30 = vmax.f32 %v423_v21, 0.0  ;;  %v440_v33 = vmax.f32 %v424_v22, 0.0  ;;  %v348_v0 = vmul.f32 %v2463_v63, %v2451_v44  ;;  %v288_v45 = vmul.f32 %v2465_v1, %v246_v15  ;;  %v1048_v44 = vld [vmem:[#allocation16 + $0x30] sm:$0xff] }
 0x17e   :  { %v2478_v17 = vpop.permute.xlu1 %255  ;;  %1007 = vperm.xlu1 %1793, %v921_v9   ;;  %v289_v46 = vmul.f32 %v2467_v2, %v246_v15  ;;  %v1477_v21 = vld [vmem:[#allocation22] sm:$0xff] }
 0x180   :  { %v391_v26 = vpop.permute.xlu0 %390  ;;  %v364_v57 = vadd.f32 %v348_v0, %v289_v46  ;;  %815 = vperm.xlu0 %1792, %v811_v13   ;;  %v455_v13 = vld [vmem:[#allocation8] sm:$0xff] }
 0x181   :  { %v425_v27 = vadd.f32 %v391_v26, %v361_v23  ;;  %v426_v28 = vadd.f32 %v391_v26, %v362_v24  ;;  %v1143_v24 = vld [vmem:[#allocation19 + $0x28] sm:$0xff]  ;;  %v352_v26 = vmul.f32 %v2463_v63, %v2453_v48 }
 0x182   :  { %v261_v29 = vpop.permute.xlu1 %260  ;;  %1794 = vset.pattern.permute.xlu1 %v2159_v7  ;;  %v363_v7 = vadd.f32 %v347_v41, %v288_v45  ;;  %v356_v41 = vmul.f32 %v2463_v63, %v2455_v51 }
 0x183   :  { %v441_v32 = vmax.f32 %v425_v27, 0.0  ;;  %v442_v34 = vmax.f32 %v426_v28, 0.0  ;;  %1072 = vperm.xlu1 %1794, %v1046_v36   ;;  %v294_v19 = vmul.f32 %v2465_v1, %v261_v29  ;;  %v295_v20 = vmul.f32 %v2467_v2, %v261_v29 }
 0x184   :  { %v401_v50 = vpop.permute.xlu0 %400  ;;  %v292_v27 = vmul.f32 %v2465_v1, %v2478_v17  ;;  %v293_v28 = vmul.f32 %v2467_v2, %v2478_v17  ;;  %1481 = vperm.xlu0 %1792, %v1477_v21   ;;  %v355_v17 = vmul.f32 %v2461_v62, %v2455_v51  ;;  %v1149_v51 = vld [vmem:[#allocation19 + $0x58] sm:$0xff]  ;;  %v460_v21 = vld [vmem:[#allocation8 + $0x28] sm:$0xff] }
 0x185   :  { %v1659_v39 = vpack.c.bf16 %v442_v34, %v440_v33  ;;  %v1661_v40 = vpack.c.bf16 %v441_v32, %v439_v30  ;;  %v429_v55 = vadd.f32 %v401_v50, %v365_v52  ;;  %v430_v56 = vadd.f32 %v401_v50, %v366_v54  ;;  %v1145_v34 = vld [vmem:[#allocation19 + $0x38] sm:$0xff] }
 0x186   :  { %v367_v35 = vadd.f32 %v351_v25, %v292_v27  ;;  %v368_v36 = vadd.f32 %v352_v26, %v293_v28  ;;  %v464_v25 = vld [vmem:[#allocation8 + $0x48] sm:$0xff]  ;;  %v465_v26 = vld [vmem:[#allocation8 + $0x50] sm:$0xff]  ;;  %v466_v27 = vld [vmem:[#allocation8 + $0x58] sm:$0xff] }
 0x187   :  { %v322_v47 = vpop.permute.xlu1 %321  ;;  %1660 = vmatprep.subr.bf16.mxu0 %v1659_v39  ;;  %1082 = vperm.xlu1 %1794, %v1048_v44   ;;  %v445_v3 = vmax.f32 %v429_v55, 0.0  ;;  %v446_v4 = vmax.f32 %v430_v56, 0.0  ;;  %v467_v28 = vld [vmem:[#allocation8 + $0x60] sm:$0xff] }
 0x188   :  { %1662 = vmatpush1.bf16.msra.mxu0 %v1661_v40  ;;  %v353_v14 = vmul.f32 %v2461_v62, %v322_v47  ;;  %v354_v15 = vmul.f32 %v2463_v63, %v322_v47  ;;  %v411_v30 = vpop.permute.xlu0 %410 }
 0x18a   :  { %v369_v22 = vadd.f32 %v353_v14, %v294_v19  ;;  %v370_v23 = vadd.f32 %v354_v15, %v295_v20  ;;  %v812_v14 = vld [vmem:[#allocation13 + $0x8] sm:$0xff]  ;;  %v456_v15 = vld [vmem:[#allocation8 + $0x8] sm:$0xff]  ;;  %v459_v20 = vld [vmem:[#allocation8 + $0x20] sm:$0xff] }
 0x18b   :  { %1087 = vperm.xlu1 %1794, %v1049_v59   ;;  %v458_v19 = vld [vmem:[#allocation8 + $0x18] sm:$0xff] }
 0x18c   :  { %v396_v58 = vpop.permute.xlu1 %395  ;;  %v433_v32 = vadd.f32 %v411_v30, %v369_v22  ;;  %v434_v33 = vadd.f32 %v411_v30, %v370_v23  ;;  %v461_v22 = vld [vmem:[#allocation8 + $0x30] sm:$0xff]  ;;  %v462_v23 = vld [vmem:[#allocation8 + $0x38] sm:$0xff]  ;;  %v468_v30 = vld [vmem:[#allocation8 + $0x68] sm:$0xff] }
 0x18d   :  { %v427_v60 = vadd.f32 %v396_v58, %v363_v7  ;;  %v428_v61 = vadd.f32 %v396_v58, %v364_v57 }
 0x18e   :  { %v449_v0 = vmax.f32 %v433_v32, 0.0  ;;  %v450_v42 = vmax.f32 %v434_v33, 0.0  ;;  %v470_v32 = vld [vmem:[#allocation8 + $0x78] sm:$0xff] }
 0x18f   :  { %v443_v5 = vmax.f32 %v427_v60, 0.0  ;;  %v444_v6 = vmax.f32 %v428_v61, 0.0  ;;  %1161 = vperm.xlu1 %1794, %v1139_v10  }
 0x190   :  { %v266_v9 = vpop.permute.xlu1 %265 }
 0x191   :  { %v1663_v11 = vpack.c.bf16 %v446_v4, %v444_v6  ;;  %v1665_v12 = vpack.c.bf16 %v445_v3, %v443_v5  ;;  %v296_v37 = vmul.f32 %v2465_v1, %v266_v9  ;;  %v297_v38 = vmul.f32 %v2467_v2, %v266_v9  ;;  %v1151_v4 = vld [vmem:[#allocation19 + $0x68] sm:$0xff] }
 0x193   :  { %1664 = vmatprep.subr.bf16.mxu0 %v1663_v11  ;;  %1171 = vperm.xlu1 %1794, %v1141_v18   ;;  %v371_v44 = vadd.f32 %v355_v17, %v296_v37  ;;  %v372_v52 = vadd.f32 %v356_v41, %v297_v38  ;;  %v457_v18 = vld [vmem:[#allocation8 + $0x10] sm:$0xff]  ;;  %v2552_v38 = vpop.permute.xlu0 %979 }
 0x194   :  { %v271_v16 = vpop.permute.xlu1 %270  ;;  %1666 = vmatpush1.bf16.msra.mxu0 %v1665_v12  ;;  %v1153_v12 = vld [vmem:[#allocation19 + $0x78] sm:$0xff] }
 0x195   :  { %v298_v54 = vmul.f32 %v2465_v1, %v271_v16  ;;  %v299_v55 = vmul.f32 %v2467_v2, %v271_v16  ;;  %v1478_v16 = vld [vmem:[#allocation22 + $0x8] sm:$0xff] }
 0x197   :  { %1181 = vperm.xlu1 %1794, %v1143_v24   ;;  %v463_v24 = vld [vmem:[#allocation8 + $0x40] sm:$0xff] }
 0x199   :  { %v330_v29 = vpop.permute.xlu1 %329 }
 0x19a   :  { %v357_v45 = vmul.f32 %v2461_v62, %v330_v29  ;;  %v358_v46 = vmul.f32 %v2463_v63, %v330_v29  ;;  %v469_v29 = vld [vmem:[#allocation8 + $0x70] sm:$0xff] }
 0x19b   :  { %1191 = vperm.xlu1 %1794, %v1145_v34  }
 0x19c   :  { %v373_v58 = vadd.f32 %v357_v45, %v298_v54  ;;  %v374_v59 = vadd.f32 %v358_v46, %v299_v55 }
 0x19e   :  { %v406_v48 = vpop.permute.xlu1 %405 }
 0x19f   :  { %v431_v39 = vadd.f32 %v406_v48, %v367_v35  ;;  %v432_v40 = vadd.f32 %v406_v48, %v368_v36  ;;  %1201 = vperm.xlu1 %1794, %v1147_v43  }
 0x1a1   :  { %v447_v47 = vmax.f32 %v431_v39, 0.0  ;;  %v448_v49 = vmax.f32 %v432_v40, 0.0  ;;  %v2556_v39 = vpop.permute.xlu0 %995 }
 0x1a2   :  { %v416_v50 = vpop.permute.xlu1 %415 }
 0x1a3   :  { %v1667_v56 = vpack.c.bf16 %v450_v42, %v448_v49  ;;  %v1669_v7 = vpack.c.bf16 %v449_v0, %v447_v47  ;;  %v435_v57 = vadd.f32 %v416_v50, %v371_v44  ;;  %v436_v53 = vadd.f32 %v416_v50, %v372_v52  ;;  %1211 = vperm.xlu1 %1794, %v1149_v51  }
 0x1a5   :  { %1668 = vmatprep.subr.bf16.mxu0 %v1667_v56  ;;  %v451_v5 = vmax.f32 %v435_v57, 0.0  ;;  %v452_v6 = vmax.f32 %v436_v53, 0.0  ;;  %v2560_v17 = vpop.permute.xlu0 %1003 }
 0x1a6   :  { %v421_v60 = vpop.permute.xlu1 %420  ;;  %1670 = vmatpush1.bf16.msra.mxu0 %v1669_v7 }
 0x1a7   :  { %v437_v61 = vadd.f32 %v421_v60, %v373_v58  ;;  %v438_v3 = vadd.f32 %v421_v60, %v374_v59  ;;  %1221 = vperm.xlu1 %1794, %v1151_v4  }
 0x1a9   :  { %v453_v8 = vmax.f32 %v437_v61, 0.0  ;;  %v454_v9 = vmax.f32 %v438_v3, 0.0  ;;  %v490_v0 = vpop.permute.xlu0 %489 }
 0x1aa   :  { %v495_v33 = vpop.permute.xlu1 %494 }
 0x1ab   :  { %v1671_v10 = vpack.c.bf16 %v454_v9, %v452_v6  ;;  %v1673_v11 = vpack.c.bf16 %v453_v8, %v451_v5  ;;  %1231 = vperm.xlu1 %1794, %v1153_v12  }
 0x1ad   :  { %1672 = vmatprep.subr.bf16.mxu0 %v1671_v10  ;;  %v500_v43 = vpop.permute.xlu0 %499 }
 0x1ae   :  { %1674 = vmatpush1.bf16.msra.mxu0 %v1673_v11  ;;  %v505_v34 = vpop.permute.xlu1 %504 }
 0x1af   :  { %820 = vperm.xlu1 %1794, %v812_v14  }
 0x1b1   :  { %1619 = vmatmul.mubr.msk.f32.vlgmr.msra.gmra.mrb[0].mxu0 %vm567_vm0, %v455_v13  ;;  %v510_v49 = vpop.permute.xlu0 %509 }
 0x1b2   :  { %686 = vmatprep.mubr.f32.mxu0 %v2160_v31  ;;  %v515_v35 = vpop.permute.xlu1 %514 }
 0x1b3   :  { %1486 = vperm.xlu1 %1794, %v1478_v16  }
 0x1b5   :  { %1620 = vmatmul.mubr.msk.f32.gmra.mrb[2].mxu0 %vm567_vm0, %v456_v15  ;;  %v520_v57 = vpop.permute.xlu0 %519 }
 0x1b6   :  { %692 = vmatprep.mubr.f32.mxu0 %v2160_v31  ;;  %v2548_v36 = vpop.permute.xlu1 %524 }
 0x1b9   :  { %1621 = vmatmul.mubr.msk.f32.gmra.mrb[4].mxu0 %vm567_vm0, %v457_v18  ;;  %v530_v11 = vpop.permute.xlu0 %529 }
 0x1ba   :  { %698 = vmatprep.mubr.f32.mxu0 %v2160_v31  ;;  %v2550_v37 = vpop.permute.xlu1 %534 }
 0x1bd   :  { %1622 = vmatmul.mubr.msk.f32.gmra.mrb[6].mxu0 %vm567_vm0, %v458_v19 }
 0x1be   :  { %704 = vmatprep.mubr.f32.mxu0 %v2160_v31  ;;  %v2554_v48 = vpop.permute.xlu1 %544 }
 0x1c1   :  { %1623 = vmatmul.mubr.msk.f32.gmra.mrb[8].mxu0 %vm567_vm0, %v459_v20 }
 0x1c2   :  { %710 = vmatprep.mubr.f32.mxu0 %v2160_v31  ;;  %v2558_v40 = vpop.permute.xlu1 %554 }
 0x1c5   :  { %1624 = vmatmul.mubr.msk.f32.gmra.mrb[10].mxu0 %vm567_vm0, %v460_v21 }
 0x1c6   :  { %716 = vmatprep.mubr.f32.mxu0 %v2160_v31  ;;  %v2562_v41 = vpop.permute.xlu1 %564 }
 0x1c9   :  { %1625 = vmatmul.mubr.msk.f32.gmra.mrb[12].mxu0 %vm567_vm0, %v461_v22 }
 0x1ca   :  { %722 = vmatprep.mubr.f32.mxu0 %v2160_v31  ;;  %v2564_v42 = vpop.permute.xlu1 %929 }
 0x1cd   :  { %1626 = vmatmul.mubr.msk.f32.gmra.mrb[14].mxu0 %vm567_vm0, %v462_v23 }
 0x1ce   :  { %728 = vmatprep.mubr.f32.mxu0 %v2160_v31 }
 0x1cf   :  { %v2566_v45 = vpop.permute.xlu1 %983 }
 0x1d1   :  { %1627 = vmatmul.mubr.msk.f32.gmra.mrb[16].mxu0 %vm567_vm0, %v463_v24 }
 0x1d2   :  { %734 = vmatprep.mubr.f32.mxu0 %v2160_v31 }
 0x1d4   :  { %v2568_v46 = vpop.permute.xlu1 %934 }
 0x1d5   :  { %1628 = vmatmul.mubr.msk.f32.gmra.mrb[18].mxu0 %vm567_vm0, %v464_v25  ;;  %v540_v25 = vpop.permute.xlu0 %539 }
 0x1d6   :  { %740 = vmatprep.mubr.f32.mxu0 %v2160_v31 }
 0x1d9   :  { %1629 = vmatmul.mubr.msk.f32.gmra.mrb[20].mxu0 %vm567_vm0, %v465_v26  ;;  %v2570_v55 = vpop.permute.xlu1 %987 }
 0x1da   :  { %746 = vmatprep.mubr.f32.mxu0 %v2160_v31 }
 0x1dd   :  { %1630 = vmatmul.mubr.msk.f32.gmra.mrb[22].mxu0 %vm567_vm0, %v466_v27  ;;  %v2572_v6 = vpop.permute.xlu1 %991 }
 0x1de   :  { %752 = vmatprep.mubr.f32.mxu0 %v2160_v31 }
 0x1e1   :  { %1631 = vmatmul.mubr.msk.f32.gmra.mrb[24].mxu0 %vm567_vm0, %v467_v28 }
 0x1e2   :  { %758 = vmatprep.mubr.f32.mxu0 %v2160_v31  ;;  %v2574_v21 = vpop.permute.xlu1 %1057 }
 0x1e5   :  { %1632 = vmatmul.mubr.msk.f32.gmra.mrb[26].mxu0 %vm567_vm0, %v468_v30 }
 0x1e6   :  { %764 = vmatprep.mubr.f32.mxu0 %v2160_v31  ;;  %v2576_v30 = vpop.permute.xlu1 %949 }
 0x1e9   :  { %1633 = vmatmul.mubr.msk.f32.gmra.mrb[28].mxu0 %vm567_vm0, %v469_v29 }
 0x1ea   :  { %770 = vmatprep.mubr.f32.mxu0 %v2160_v31 }
 0x1ed   :  { %1634 = vmatmul.mubr.msk.f32.gmra.mrb[30].mxu0 %vm567_vm0, %v470_v32 }
 0x1ee   :  { %1553 = vmatprep.mubr.f32.mxu0 %v2160_v31 }
 0x284   :  { %v682_v47 = vpop.f32.mrb[0].mxu0 }
 0x285   :  { %v684_v50 = vpop.f32.mrb[1].mxu0  ;;  %v683_v44 = vadd.f32 %v682_v47, %v490_v0 }
 0x286   :  { %v685_v52 = vadd.f32 %v684_v50, %v490_v0 }
 0x287   :  { %v777_v53 = vmax.f32 %v683_v44, 0.0  ;;  %v2578_v44 = vpop.permute.xlu0 %549 }
 0x288   :  { %v688_v54 = vpop.f32.mrb[2].mxu0  ;;  %v778_v59 = vmax.f32 %v685_v52, 0.0 }
 0x289   :  { %v689_v56 = vadd.f32 %v688_v54, %v495_v33  ;;  %v690_v7 = vpop.f32.mrb[3].mxu0 }
 0x28a   :  { %v691_v51 = vadd.f32 %v690_v7, %v495_v33  ;;  %v2580_v7 = vpop.permute.xlu1 %999 }
 0x28b   :  { %v779_v58 = vmax.f32 %v689_v56, 0.0 }
 0x28c   :  { %v780_v60 = vmax.f32 %v691_v51, 0.0  ;;  %v694_v61 = vpop.f32.mrb[4].mxu0 }
 0x28d   :  { %v696_v3 = vpop.f32.mrb[5].mxu0  ;;  %v1677_v4 = vpack.c.bf16 %v779_v58, %v777_v53  ;;  %v695_v8 = vadd.f32 %v694_v61, %v500_v43 }
 0x28e   :  { %v1675_v5 = vpack.c.bf16 %v780_v60, %v778_v59  ;;  %v697_v9 = vadd.f32 %v696_v3, %v500_v43  ;;  %v2584_v60 = vpop.permute.xlu0 %559 }
 0x28f   :  { %v781_v15 = vmax.f32 %v695_v8, 0.0 }
 0x290   :  { %v700_v10 = vpop.f32.mrb[6].mxu0  ;;  %1676 = vmatprep.subr.bf16.mxu1 %v1675_v5  ;;  %v782_v18 = vmax.f32 %v697_v9, 0.0  ;;  %v2586_v9 = vpop.permute.xlu1 %1062 }
 0x291   :  { %v701_v12 = vadd.f32 %v700_v10, %v505_v34  ;;  %v702_v13 = vpop.f32.mrb[7].mxu0  ;;  %1678 = vmatpush1.bf16.msra.mxu1 %v1677_v4 }
 0x292   :  { %v703_v14 = vadd.f32 %v702_v13, %v505_v34 }
 0x293   :  { %v783_v16 = vmax.f32 %v701_v12, 0.0 }
 0x294   :  { %v784_v19 = vmax.f32 %v703_v14, 0.0  ;;  %v706_v20 = vpop.f32.mrb[8].mxu0 }
 0x295   :  { %v1681_v22 = vpack.c.bf16 %v783_v16, %v781_v15  ;;  %v708_v23 = vpop.f32.mrb[9].mxu0  ;;  %v707_v26 = vadd.f32 %v706_v20, %v510_v49  ;;  %v925_v16 = vpop.permute.xlu0 %924 }
 0x296   :  { %v1679_v24 = vpack.c.bf16 %v784_v19, %v782_v18  ;;  %v709_v27 = vadd.f32 %v708_v23, %v510_v49  ;;  %v2590_v20 = vpop.permute.xlu1 %954 }
 0x297   :  { %v785_v34 = vmax.f32 %v707_v26, 0.0 }
 0x298   :  { %v712_v28 = vpop.f32.mrb[10].mxu0  ;;  %1680 = vmatprep.subr.bf16.mxu1 %v1679_v24  ;;  %v786_v43 = vmax.f32 %v709_v27, 0.0 }
 0x299   :  { %v713_v29 = vadd.f32 %v712_v28, %v515_v35  ;;  %v714_v32 = vpop.f32.mrb[11].mxu0  ;;  %1682 = vmatpush1.bf16.msra.mxu1 %v1681_v22 }
 0x29a   :  { %v715_v33 = vadd.f32 %v714_v32, %v515_v35 }
 0x29b   :  { %v787_v0 = vmax.f32 %v713_v29, 0.0 }
 0x29c   :  { %v788_v47 = vmax.f32 %v715_v33, 0.0  ;;  %v718_v50 = vpop.f32.mrb[12].mxu0 }
 0x29d   :  { %v1685_v52 = vpack.c.bf16 %v787_v0, %v785_v34  ;;  %v720_v54 = vpop.f32.mrb[13].mxu0  ;;  %v719_v49 = vadd.f32 %v718_v50, %v520_v57  ;;  %v1010_v34 = vmul.f32 %v2552_v38, %v2461_v62  ;;  %v962_v0 = vmul.f32 %v925_v16, %v2465_v1 }
 0x29e   :  { %v1683_v56 = vpack.c.bf16 %v788_v47, %v786_v43  ;;  %v721_v51 = vadd.f32 %v720_v54, %v520_v57  ;;  %v963_v50 = vmul.f32 %v925_v16, %v2467_v2 }
 0x29f   :  { %v789_v61 = vmax.f32 %v719_v49, 0.0 }
 0x2a0   :  { %v724_v53 = vpop.f32.mrb[14].mxu0  ;;  %1684 = vmatprep.subr.bf16.mxu1 %v1683_v56  ;;  %v790_v4 = vmax.f32 %v721_v51, 0.0 }
 0x2a1   :  { %v725_v58 = vadd.f32 %v724_v53, %v2548_v36  ;;  %v726_v59 = vpop.f32.mrb[15].mxu0  ;;  %1686 = vmatpush1.bf16.msra.mxu1 %v1685_v52  ;;  %v2598_v52 = vpop.permute.xlu1 %959 }
 0x2a2   :  { %v727_v35 = vadd.f32 %v726_v59, %v2548_v36 }
 0x2a3   :  { %v791_v3 = vmax.f32 %v725_v58, 0.0  ;;  %v1026_v58 = vadd.f32 %v1010_v34, %v962_v0 }
 0x2a4   :  { %v792_v5 = vmax.f32 %v727_v35, 0.0  ;;  %v730_v8 = vpop.f32.mrb[16].mxu0 }
 0x2a5   :  { %v1689_v10 = vpack.c.bf16 %v791_v3, %v789_v61  ;;  %v732_v12 = vpop.f32.mrb[17].mxu0  ;;  %v731_v13 = vadd.f32 %v730_v8, %v530_v11  ;;  %v2604_v61 = vmul.f32 %v2556_v39, %v2461_v62  ;;  %v2625_v16 = vpop.permute.xlu1 %1007 }
 0x2a6   :  { %v1687_v57 = vpack.c.bf16 %v792_v5, %v790_v4  ;;  %v733_v14 = vadd.f32 %v732_v12, %v530_v11  ;;  %v940_v11 = vpop.permute.xlu0 %939  ;;  %v1013_v12 = vmul.f32 %v2566_v45, %v2463_v63 }
 0x2a7   :  { %v793_v22 = vmax.f32 %v731_v13, 0.0  ;;  %v2620_v13 = vmul.f32 %v2560_v17, %v2463_v63 }
 0x2a8   :  { %v736_v15 = vpop.f32.mrb[18].mxu0  ;;  %1688 = vmatprep.subr.bf16.mxu1 %v1687_v57  ;;  %v794_v24 = vmax.f32 %v733_v14, 0.0  ;;  %v964_v14 = vmul.f32 %v2564_v42, %v2465_v1 }
 0x2a9   :  { %v737_v18 = vadd.f32 %v736_v15, %v2550_v37  ;;  %v738_v36 = vpop.f32.mrb[19].mxu0  ;;  %1690 = vmatpush1.bf16.msra.mxu1 %v1689_v10  ;;  %v2614_v10 = vmul.f32 %v2560_v17, %v2461_v62  ;;  %v968_v15 = vmul.f32 %v940_v11, %v2465_v1 }
 0x2aa   :  { %v739_v19 = vadd.f32 %v738_v36, %v2550_v37  ;;  %v1011_v37 = vmul.f32 %v2552_v38, %v2463_v63  ;;  %v1012_v38 = vmul.f32 %v2566_v45, %v2461_v62  ;;  %v1053_v3 = vpop.permute.xlu0 %1052  ;;  %v969_v36 = vmul.f32 %v940_v11, %v2467_v2 }
 0x2ab   :  { %v795_v23 = vmax.f32 %v737_v18, 0.0  ;;  %v965_v18 = vmul.f32 %v2564_v42, %v2467_v2  ;;  %v2631_v45 = vadd.f32 %v1053_v3, %v1026_v58  ;;  %v967_v42 = vmul.f32 %v2568_v46, %v2467_v2 }
 0x2ac   :  { %v796_v26 = vmax.f32 %v739_v19, 0.0  ;;  %v742_v27 = vpop.f32.mrb[20].mxu0  ;;  %v1027_v4 = vadd.f32 %v1011_v37, %v963_v50  ;;  %v966_v11 = vmul.f32 %v2568_v46, %v2465_v1  ;;  %v2655_v46 = vpop.permute.xlu1 %1072 }
 0x2ad   :  { %v1693_v28 = vpack.c.bf16 %v795_v23, %v793_v22  ;;  %v744_v29 = vpop.f32.mrb[21].mxu0  ;;  %v743_v33 = vadd.f32 %v742_v27, %v540_v25  ;;  %v1017_v22 = vmul.f32 %v2572_v6, %v2463_v63 }
 0x2ae   :  { %v1691_v32 = vpack.c.bf16 %v796_v26, %v794_v24  ;;  %v745_v43 = vadd.f32 %v744_v29, %v540_v25  ;;  %v2636_v23 = vadd.f32 %v1053_v3, %v1027_v4  ;;  %v1028_v24 = vadd.f32 %v1012_v38, %v964_v14 }
 0x2af   :  { %v797_v51 = vmax.f32 %v743_v33, 0.0  ;;  %v1029_v29 = vadd.f32 %v1013_v12, %v965_v18  ;;  %v1014_v33 = vmul.f32 %v2570_v55, %v2461_v62  ;;  %v972_v18 = vmul.f32 %v2576_v30, %v2465_v1 }
 0x2b0   :  { %v748_v47 = vpop.f32.mrb[22].mxu0  ;;  %1692 = vmatprep.subr.bf16.mxu1 %v1691_v32  ;;  %v798_v59 = vmax.f32 %v745_v43, 0.0  ;;  %v1016_v43 = vmul.f32 %v2572_v6, %v2461_v62  ;;  %v1021_v6 = vmul.f32 %v2580_v7, %v2463_v63 }
 0x2b1   :  { %v749_v54 = vadd.f32 %v748_v47, %v2554_v48  ;;  %v750_v56 = vpop.f32.mrb[23].mxu0  ;;  %1694 = vmatpush1.bf16.msra.mxu1 %v1693_v28  ;;  %v1015_v28 = vmul.f32 %v2570_v55, %v2463_v63  ;;  %v2651_v47 = vadd.f32 %v2574_v21, %v1028_v24  ;;  %v1083_v24 = vpop.permute.xlu1 %1082 }
 0x2b2   :  { %v751_v49 = vadd.f32 %v750_v56, %v2554_v48  ;;  %v2610_v48 = vmul.f32 %v2556_v39, %v2463_v63  ;;  %v1106_v56 = vmax.f32 %v2631_v45, 0.0 }
 0x2b3   :  { %v799_v53 = vmax.f32 %v749_v54, 0.0  ;;  %v1031_v58 = vadd.f32 %v1015_v28, %v967_v42  ;;  %v1108_v3 = vmax.f32 %v2651_v47, 0.0  ;;  %v1025_v42 = vmul.f32 %v2625_v16, %v2463_v63 }
 0x2b4   :  { %v800_v25 = vmax.f32 %v751_v49, 0.0  ;;  %v754_v35 = vpop.f32.mrb[24].mxu0  ;;  %v1033_v49 = vadd.f32 %v1017_v22, %v969_v36  ;;  %v1024_v63 = vmul.f32 %v2625_v16, %v2461_v62 }
 0x2b5   :  { %v1697_v5 = vpack.c.bf16 %v799_v53, %v797_v51  ;;  %v756_v8 = vpop.f32.mrb[25].mxu0  ;;  %v755_v39 = vadd.f32 %v754_v35, %v2578_v44  ;;  %v973_v53 = vmul.f32 %v2576_v30, %v2467_v2 }
 0x2b6   :  { %v1695_v57 = vpack.c.bf16 %v800_v25, %v798_v59  ;;  %v757_v19 = vadd.f32 %v756_v8, %v2578_v44  ;;  %v945_v44 = vpop.permute.xlu0 %944  ;;  %v1107_v25 = vmax.f32 %v2636_v23, 0.0  ;;  %v1030_v8 = vadd.f32 %v1014_v33, %v966_v11 }
 0x2b7   :  { %v801_v34 = vmax.f32 %v755_v39, 0.0  ;;  %v970_v35 = vmul.f32 %v945_v44, %v2465_v1  ;;  %v971_v38 = vmul.f32 %v945_v44, %v2467_v2 }
 0x2b8   :  { %v760_v17 = vpop.f32.mrb[26].mxu0  ;;  %1696 = vmatprep.subr.bf16.mxu1 %v1695_v57  ;;  %v802_v37 = vmax.f32 %v757_v19, 0.0  ;;  %v1020_v19 = vmul.f32 %v2580_v7, %v2461_v62  ;;  %v1094_v33 = vadd.f32 %v2586_v9, %v1030_v8 }
 0x2b9   :  { %v761_v26 = vadd.f32 %v760_v17, %v2558_v40  ;;  %v762_v27 = vpop.f32.mrb[27].mxu0  ;;  %1698 = vmatpush1.bf16.msra.mxu1 %v1697_v5  ;;  %v1032_v5 = vadd.f32 %v1016_v43, %v968_v15  ;;  %v1037_v17 = vadd.f32 %v1021_v6, %v973_v53  ;;  %v1095_v15 = vadd.f32 %v2586_v9, %v1031_v58 }
 0x2ba   :  { %v763_v32 = vadd.f32 %v762_v27, %v2558_v40  ;;  %v1093_v40 = vadd.f32 %v2574_v21, %v1029_v29  ;;  %v1068_v4 = vpop.permute.xlu0 %1067  ;;  %v1035_v23 = vadd.f32 %v2610_v48, %v971_v38  ;;  %v977_v27 = vmul.f32 %v2598_v52, %v2467_v2 }
 0x2bb   :  { %v803_v0 = vmax.f32 %v761_v26, 0.0  ;;  %v1097_v39 = vadd.f32 %v1068_v4, %v1033_v49  ;;  %v1096_v29 = vadd.f32 %v1068_v4, %v1032_v5  ;;  %v1036_v11 = vadd.f32 %v1020_v19, %v972_v18  ;;  %v1124_v18 = vld [vmem:[#allocation17 + $0x10] sm:$0xff]  ;;  %v1127_v19 = vld [vmem:[#allocation17 + $0x28] sm:$0xff] }
 0x2bc   :  { %v804_v50 = vmax.f32 %v763_v32, 0.0  ;;  %v766_v54 = vpop.f32.mrb[28].mxu0  ;;  %v1109_v14 = vmax.f32 %v1093_v40, 0.0  ;;  %v974_v48 = vmul.f32 %v2590_v20, %v2465_v1  ;;  %v1034_v43 = vadd.f32 %v2604_v61, %v970_v35  ;;  %v1088_v40 = vpop.permute.xlu1 %1087 }
 0x2bd   :  { %v1701_v51 = vpack.c.bf16 %v803_v0, %v801_v34  ;;  %v768_v55 = vpop.f32.mrb[29].mxu0  ;;  %v767_v21 = vadd.f32 %v766_v54, %v2584_v60  ;;  %v1113_v44 = vmax.f32 %v1097_v39, 0.0  ;;  %v1099_v47 = vadd.f32 %v2655_v46, %v1035_v23  ;;  %v1123_v39 = vld [vmem:[#allocation17 + $0x8] sm:$0xff]  ;;  %v1132_v23 = vld [vmem:[#allocation17 + $0x50] sm:$0xff] }
 0x2be   :  { %v1699_v59 = vpack.c.bf16 %v804_v50, %v802_v37  ;;  %v769_v12 = vadd.f32 %v768_v55, %v2584_v60  ;;  %v975_v60 = vmul.f32 %v2590_v20, %v2467_v2  ;;  %v1078_v0 = vpop.permute.xlu0 %1077  ;;  %v976_v2 = vmul.f32 %v2598_v52, %v2465_v1  ;;  %v809_v20 = vld [vmem:[#allocation11] sm:$0xff] }
 0x2bf   :  { %v805_v26 = vmax.f32 %v767_v21, 0.0  ;;  %v1101_v37 = vadd.f32 %v1078_v0, %v1037_v17  ;;  %v1111_v50 = vmax.f32 %v1095_v15, 0.0  ;;  %v1041_v9 = vadd.f32 %v1025_v42, %v977_v27  ;;  %v1128_v17 = vld [vmem:[#allocation17 + $0x30] sm:$0xff]  ;;  %v1129_v15 = vld [vmem:[#allocation17 + $0x38] sm:$0xff] }
 0x2c0   :  { %v772_v57 = vpop.f32.mrb[30].mxu0  ;;  %1700 = vmatprep.subr.bf16.mxu1 %v1699_v59  ;;  %v806_v7 = vmax.f32 %v769_v12, 0.0  ;;  %v1039_v54 = vadd.f32 %v2620_v13, %v975_v60  ;;  %v1709_v49 = vpack.c.bf16 %v1108_v3, %v1106_v56  ;;  %v1100_v55 = vadd.f32 %v1078_v0, %v1036_v11  ;;  %v810_v59 = vld [vmem:[#allocation11 + $0x8] sm:$0xff]  ;;  %v1136_v27 = vld [vmem:[#allocation17 + $0x70] sm:$0xff]  ;;  %v1137_v42 = vld [vmem:[#allocation17 + $0x78] sm:$0xff] }
 0x2c1   :  { %v773_v36 = vadd.f32 %v772_v57, %v2562_v41  ;;  %v774_v45 = vpop.f32.mrb[31].mxu0  ;;  %1702 = vmatpush1.bf16.msra.mxu1 %v1701_v51  ;;  %v1112_v51 = vmax.f32 %v1096_v29, 0.0  ;;  %v1110_v1 = vmax.f32 %v1094_v33, 0.0  ;;  %v1098_v62 = vadd.f32 %v2655_v46, %v1034_v43  ;;  %v1131_v60 = vld [vmem:[#allocation17 + $0x48] sm:$0xff] }
 0x2c2   :  { %v775_v22 = vadd.f32 %v774_v45, %v2562_v41  ;;  %v1707_v41 = vpack.c.bf16 %v1109_v14, %v1107_v25  ;;  %v1115_v52 = vmax.f32 %v1099_v47, 0.0  ;;  %v1038_v61 = vadd.f32 %v2614_v10, %v974_v48  ;;  %v1122_v14 = vld [vmem:[#allocation17] sm:$0xff] }
 0x2c3   :  { %v807_v30 = vmax.f32 %v773_v36, 0.0  ;;  %v1040_v16 = vadd.f32 %v1024_v63, %v976_v2  ;;  %v1103_v53 = vadd.f32 %v1083_v24, %v1039_v54  ;;  %v1105_v6 = vadd.f32 %v1088_v40, %v1041_v9  ;;  %v1125_v36 = vld [vmem:[#allocation17 + $0x18] sm:$0xff]  ;;  %v1126_v45 = vld [vmem:[#allocation17 + $0x20] sm:$0xff] }
 0x2c4   :  { %v808_v28 = vmax.f32 %v775_v22, 0.0  ;;  %v1711_v13 = vpack.c.bf16 %v1113_v44, %v1111_v50  ;;  %v1117_v58 = vmax.f32 %v1101_v37, 0.0  ;;  %v1713_v56 = vpack.c.bf16 %v1112_v51, %v1110_v1  ;;  %v1130_v22 = vld [vmem:[#allocation17 + $0x40] sm:$0xff] }
 0x2c5   :  { %v1705_v32 = vpack.c.bf16 %v807_v30, %v805_v26  ;;  %v1114_v25 = vmax.f32 %v1098_v62, 0.0  ;;  %v1116_v35 = vmax.f32 %v1100_v55, 0.0  ;;  %v1102_v38 = vadd.f32 %v1083_v24, %v1038_v61  ;;  %v1133_v24 = vld [vmem:[#allocation17 + $0x58] sm:$0xff]  ;;  %v1134_v26 = vld [vmem:[#allocation17 + $0x60] sm:$0xff]  ;;  %v1135_v30 = vld [vmem:[#allocation17 + $0x68] sm:$0xff] }
 0x2c6   :  { %v1703_v34 = vpack.c.bf16 %v808_v28, %v806_v7  ;;  %v1104_v21 = vadd.f32 %v1088_v40, %v1040_v16  ;;  %v1119_v46 = vmax.f32 %v1103_v53, 0.0  ;;  %v1121_v3 = vmax.f32 %v1105_v6, 0.0  ;;  %v1157_v7 = vpop.permute.xlu0 %1156  ;;  %v1162_v28 = vpop.permute.xlu1 %1161 }
 0x2c7   :  { %v1715_v10 = vpack.c.bf16 %v1117_v58, %v1115_v52  ;;  %v1717_v4 = vpack.c.bf16 %v1116_v35, %v1114_v25  ;;  %v1118_v5 = vmax.f32 %v1102_v38, 0.0 }
 0x2c8   :  { %1704 = vmatprep.subr.bf16.mxu1 %v1703_v34  ;;  %v1120_v8 = vmax.f32 %v1104_v21, 0.0  ;;  %v1719_v12 = vpack.c.bf16 %v1121_v3, %v1119_v46 }
 0x2c9   :  { %1706 = vmatpush1.bf16.msra.mxu1 %v1705_v32 }
 0x2ca   :  { %1708 = vmatprep.subr.bf16.mxu1 %v1707_v41  ;;  %v1721_v57 = vpack.c.bf16 %v1120_v8, %v1118_v5  ;;  %v1167_v29 = vpop.permute.xlu0 %1166  ;;  %v1172_v44 = vpop.permute.xlu1 %1171 }
 0x2cc   :  { %888 = vmatmul.mubr.f32.vlgmr.msra.gmra.mrb[0].mxu1 %v809_v20 }
 0x2cd   :  { %1710 = vmatpush1.bf16.msra.mxu1 %v1709_v49  ;;  %893 = vmatprep.mubr.f32.mxu1 %v2160_v31 }
 0x2ce   :  { %1712 = vmatprep.subr.bf16.mxu1 %v1711_v13  ;;  %v1177_v32 = vpop.permute.xlu0 %1176  ;;  %v2726_v41 = vpop.permute.xlu1 %1181 }
 0x2d0   :  { %894 = vmatmul.mubr.f32.gmra.mrb[2].mxu1 %v810_v59 }
 0x2d1   :  { %1714 = vmatpush1.bf16.msra.mxu1 %v1713_v56  ;;  %1346 = vmatprep.mubr.f32.mxu1 %v2160_v31 }
 0x2d2   :  { %1716 = vmatprep.subr.bf16.mxu1 %v1715_v10  ;;  %v2728_v11 = vpop.permute.xlu0 %1186  ;;  %v2730_v33 = vpop.permute.xlu1 %1191 }
 0x2d5   :  { %1718 = vmatpush1.bf16.msra.mxu1 %v1717_v4 }
 0x2d6   :  { %1720 = vmatprep.subr.bf16.mxu1 %v1719_v12  ;;  %v2732_v48 = vpop.permute.xlu0 %1196  ;;  %v2734_v34 = vpop.permute.xlu1 %1201 }
 0x2d9   :  { %1722 = vmatpush1.bf16.msra.mxu1 %v1721_v57 }
 0x2da   :  { %v2736_v0 = vpop.permute.xlu0 %1206  ;;  %v2738_v2 = vpop.permute.xlu1 %1211 }
 0x2dc   :  { %1637 = vmatmul.mubr.msk.f32.vlgmr.msra.gmra.mrb[4].mxu1 %vm567_vm0, %v1122_v14 }
 0x2dd   :  { %1352 = vmatprep.mubr.f32.mxu1 %v2160_v31 }
 0x2de   :  { %v2740_v63 = vpop.permute.xlu0 %1216  ;;  %v2742_v43 = vpop.permute.xlu1 %1221 }
 0x2e0   :  { %1638 = vmatmul.mubr.msk.f32.gmra.mrb[6].mxu1 %vm567_vm0, %v1123_v39 }
 0x2e1   :  { %1358 = vmatprep.mubr.f32.mxu1 %v2160_v31 }
 0x2e2   :  { %v2744_v47 = vpop.permute.xlu0 %1226  ;;  %v2746_v37 = vpop.permute.xlu1 %1231 }
 0x2e4   :  { %1639 = vmatmul.mubr.msk.f32.gmra.mrb[8].mxu1 %vm567_vm0, %v1124_v18 }
 0x2e5   :  { %1364 = vmatprep.mubr.f32.mxu1 %v2160_v31 }
 0x2e6   :  { %v816_v50 = vpop.permute.xlu0 %815  ;;  %v821_v49 = vpop.permute.xlu1 %820 }
 0x2e8   :  { %1640 = vmatmul.mubr.msk.f32.gmra.mrb[10].mxu1 %vm567_vm0, %v1125_v36 }
 0x2e9   :  { %1370 = vmatprep.mubr.f32.mxu1 %v2160_v31 }
 0x2ec   :  { %1641 = vmatmul.mubr.msk.f32.gmra.mrb[12].mxu1 %vm567_vm0, %v1126_v45 }
 0x2ed   :  { %1376 = vmatprep.mubr.f32.mxu1 %v2160_v31 }
 0x2f0   :  { %1642 = vmatmul.mubr.msk.f32.gmra.mrb[14].mxu1 %vm567_vm0, %v1127_v19 }
 0x2f1   :  { %1382 = vmatprep.mubr.f32.mxu1 %v2160_v31 }
 0x2f4   :  { %1643 = vmatmul.mubr.msk.f32.gmra.mrb[16].mxu1 %vm567_vm0, %v1128_v17 }
 0x2f5   :  { %1388 = vmatprep.mubr.f32.mxu1 %v2160_v31 }
 0x2f8   :  { %1644 = vmatmul.mubr.msk.f32.gmra.mrb[18].mxu1 %vm567_vm0, %v1129_v15 }
 0x2f9   :  { %1394 = vmatprep.mubr.f32.mxu1 %v2160_v31 }
 0x2fc   :  { %1645 = vmatmul.mubr.msk.f32.gmra.mrb[20].mxu1 %vm567_vm0, %v1130_v22 }
 0x2fd   :  { %1400 = vmatprep.mubr.f32.mxu1 %v2160_v31 }
 0x300   :  { %1646 = vmatmul.mubr.msk.f32.gmra.mrb[22].mxu1 %vm567_vm0, %v1131_v60 }
 0x301   :  { %1406 = vmatprep.mubr.f32.mxu1 %v2160_v31 }
 0x304   :  { %1647 = vmatmul.mubr.msk.f32.gmra.mrb[24].mxu1 %vm567_vm0, %v1132_v23 }
 0x305   :  { %1412 = vmatprep.mubr.f32.mxu1 %v2160_v31 }
 0x308   :  { %1648 = vmatmul.mubr.msk.f32.gmra.mrb[26].mxu1 %vm567_vm0, %v1133_v24 }
 0x309   :  { %1418 = vmatprep.mubr.f32.mxu1 %v2160_v31 }
 0x30c   :  { %1649 = vmatmul.mubr.msk.f32.gmra.mrb[28].mxu1 %vm567_vm0, %v1134_v26 }
 0x30d   :  { %1424 = vmatprep.mubr.f32.mxu1 %v2160_v31 }
 0x310   :  { %1650 = vmatmul.mubr.msk.f32.gmra.mrb[30].mxu1 %vm567_vm0, %v1135_v30 }
 0x311   :  { %1430 = vmatprep.mubr.f32.mxu1 %v2160_v31 }
 0x314   :  { %1651 = vmatmul.mubr.msk.f32.gmra.mrb[32].mxu1 %vm567_vm0, %v1136_v27 }
 0x315   :  { %1436 = vmatprep.mubr.f32.mxu1 %v2160_v31 }
 0x318   :  { %1652 = vmatmul.mubr.msk.f32.gmra.mrb[34].mxu1 %vm567_vm0, %v1137_v42 }
 0x39f   :  { %v889_v54 = vpop.f32.mrb[0].mxu1 }
 0x3a0   :  { %v890_v9 = vadd.f32 %v889_v54, %v816_v50  ;;  %v891_v40 = vpop.f32.mrb[1].mxu1 }
 0x3a1   :  { %v892_v20 = vadd.f32 %v891_v40, %v816_v50 }
 0x3a3   :  { %v1655_v51 = vpack.c.bf16 %v892_v20, %v890_v9  ;;  %v895_v55 = vpop.f32.mrb[2].mxu1 }
 0x3a4   :  { %v896_v1 = vadd.f32 %v895_v55, %v821_v49  ;;  %v897_v62 = vpop.f32.mrb[3].mxu1 }
 0x3a5   :  { %912 = vst [vmem:[#allocation23] sm:$0xff] %v1655_v51  ;;  %v898_v52 = vadd.f32 %v897_v62, %v821_v49 }
 0x3a7   :  { %v1656_v61 = vpack.c.bf16 %v898_v52, %v896_v1 }
 0x3a9   :  { %913 = vst [vmem:[#allocation23 + $0x8] sm:$0xff] %v1656_v61 }
 0x3af   :  { %v1348_v16 = vpop.f32.mrb[4].mxu1 }
 0x3b0   :  { %v1350_v53 = vpop.f32.mrb[5].mxu1  ;;  %v1349_v6 = vadd.f32 %v1348_v16, %v1157_v7 }
 0x3b1   :  { %v1351_v13 = vadd.f32 %v1350_v53, %v1157_v7 }
 0x3b2   :  { %v1443_v35 = vmax.f32 %v1349_v6, 0.0 }
 0x3b3   :  { %v1354_v58 = vpop.f32.mrb[6].mxu1  ;;  %v1444_v21 = vmax.f32 %v1351_v13, 0.0 }
 0x3b4   :  { %v1355_v59 = vadd.f32 %v1354_v58, %v1162_v28  ;;  %v1356_v56 = vpop.f32.mrb[7].mxu1 }
 0x3b5   :  { %v1357_v25 = vadd.f32 %v1356_v56, %v1162_v28 }
 0x3b6   :  { %v1445_v38 = vmax.f32 %v1355_v59, 0.0 }
 0x3b7   :  { %v1446_v46 = vmax.f32 %v1357_v25, 0.0  ;;  %v1360_v3 = vpop.f32.mrb[8].mxu1 }
 0x3b8   :  { %v1725_v10 = vpack.c.bf16 %v1445_v38, %v1443_v35  ;;  %v1362_v4 = vpop.f32.mrb[9].mxu1  ;;  %v1361_v8 = vadd.f32 %v1360_v3, %v1167_v29 }
 0x3b9   :  { %v1723_v5 = vpack.c.bf16 %v1446_v46, %v1444_v21  ;;  %v1363_v12 = vadd.f32 %v1362_v4, %v1167_v29 }
 0x3ba   :  { %v1447_v36 = vmax.f32 %v1361_v8, 0.0 }
 0x3bb   :  { %v1366_v57 = vpop.f32.mrb[10].mxu1  ;;  %1724 = vmatprep.subr.bf16.mxu0 %v1723_v5  ;;  %v1448_v19 = vmax.f32 %v1363_v12, 0.0 }
 0x3bc   :  { %v1367_v14 = vadd.f32 %v1366_v57, %v1172_v44  ;;  %v1368_v39 = vpop.f32.mrb[11].mxu1  ;;  %1726 = vmatpush1.bf16.msra.mxu0 %v1725_v10 }
 0x3bd   :  { %v1369_v18 = vadd.f32 %v1368_v39, %v1172_v44 }
 0x3be   :  { %v1449_v45 = vmax.f32 %v1367_v14, 0.0 }
 0x3bf   :  { %v1450_v17 = vmax.f32 %v1369_v18, 0.0  ;;  %v1372_v15 = vpop.f32.mrb[12].mxu1 }
 0x3c0   :  { %v1729_v22 = vpack.c.bf16 %v1449_v45, %v1447_v36  ;;  %v1374_v60 = vpop.f32.mrb[13].mxu1  ;;  %v1373_v24 = vadd.f32 %v1372_v15, %v1177_v32 }
 0x3c1   :  { %v1727_v23 = vpack.c.bf16 %v1450_v17, %v1448_v19  ;;  %v1375_v26 = vadd.f32 %v1374_v60, %v1177_v32 }
 0x3c2   :  { %v1451_v28 = vmax.f32 %v1373_v24, 0.0 }
 0x3c3   :  { %v1378_v30 = vpop.f32.mrb[14].mxu1  ;;  %1728 = vmatprep.subr.bf16.mxu0 %v1727_v23  ;;  %v1452_v44 = vmax.f32 %v1375_v26, 0.0 }
 0x3c4   :  { %v1379_v27 = vadd.f32 %v1378_v30, %v2726_v41  ;;  %v1380_v42 = vpop.f32.mrb[15].mxu1  ;;  %1730 = vmatpush1.bf16.msra.mxu0 %v1729_v22 }
 0x3c5   :  { %v1381_v7 = vadd.f32 %v1380_v42, %v2726_v41 }
 0x3c6   :  { %v1453_v29 = vmax.f32 %v1379_v27, 0.0 }
 0x3c7   :  { %v1454_v50 = vmax.f32 %v1381_v7, 0.0  ;;  %v1384_v54 = vpop.f32.mrb[16].mxu1 }
 0x3c8   :  { %v1733_v9 = vpack.c.bf16 %v1453_v29, %v1451_v28  ;;  %v1385_v40 = vadd.f32 %v1384_v54, %v2728_v11  ;;  %v1386_v20 = vpop.f32.mrb[17].mxu1 }
 0x3c9   :  { %v1731_v49 = vpack.c.bf16 %v1454_v50, %v1452_v44  ;;  %v1387_v32 = vadd.f32 %v1386_v20, %v2728_v11 }
 0x3ca   :  { %v1455_v62 = vmax.f32 %v1385_v40, 0.0 }
 0x3cb   :  { %v1390_v51 = vpop.f32.mrb[18].mxu1  ;;  %1732 = vmatprep.subr.bf16.mxu0 %v1731_v49  ;;  %v1456_v61 = vmax.f32 %v1387_v32, 0.0 }
 0x3cc   :  { %v1391_v55 = vadd.f32 %v1390_v51, %v2730_v33  ;;  %v1392_v1 = vpop.f32.mrb[19].mxu1  ;;  %1734 = vmatpush1.bf16.msra.mxu0 %v1733_v9 }
 0x3cd   :  { %v1393_v41 = vadd.f32 %v1392_v1, %v2730_v33 }
 0x3ce   :  { %v1457_v52 = vmax.f32 %v1391_v55, 0.0 }
 0x3cf   :  { %v1458_v16 = vmax.f32 %v1393_v41, 0.0  ;;  %v1396_v53 = vpop.f32.mrb[20].mxu1 }
 0x3d0   :  { %v1737_v6 = vpack.c.bf16 %v1457_v52, %v1455_v62  ;;  %v1398_v13 = vpop.f32.mrb[21].mxu1  ;;  %v1397_v59 = vadd.f32 %v1396_v53, %v2732_v48  ;;  %v1475_v52 = vld [vmem:[#allocation20] sm:$0xff] }
 0x3d1   :  { %v1735_v58 = vpack.c.bf16 %v1458_v16, %v1456_v61  ;;  %v1399_v11 = vadd.f32 %v1398_v13, %v2732_v48 }
 0x3d2   :  { %v1459_v38 = vmax.f32 %v1397_v59, 0.0 }
 0x3d3   :  { %v1402_v56 = vpop.f32.mrb[22].mxu1  ;;  %1736 = vmatprep.subr.bf16.mxu0 %v1735_v58  ;;  %v1460_v46 = vmax.f32 %v1399_v11, 0.0 }
 0x3d4   :  { %v1403_v25 = vadd.f32 %v1402_v56, %v2734_v34  ;;  %v1404_v35 = vpop.f32.mrb[23].mxu1  ;;  %1738 = vmatpush1.bf16.msra.mxu0 %v1737_v6 }
 0x3d5   :  { %v1405_v33 = vadd.f32 %v1404_v35, %v2734_v34 }
 0x3d6   :  { %v1461_v21 = vmax.f32 %v1403_v25, 0.0 }
 0x3d7   :  { %v1462_v3 = vmax.f32 %v1405_v33, 0.0  ;;  %v1408_v10 = vpop.f32.mrb[24].mxu1 }
 0x3d8   :  { %v1741_v4 = vpack.c.bf16 %v1461_v21, %v1459_v38  ;;  %v1410_v5 = vpop.f32.mrb[25].mxu1  ;;  %v1409_v12 = vadd.f32 %v1408_v10, %v2736_v0 }
 0x3d9   :  { %v1739_v8 = vpack.c.bf16 %v1462_v3, %v1460_v46  ;;  %v1411_v48 = vadd.f32 %v1410_v5, %v2736_v0 }
 0x3da   :  { %v1463_v18 = vmax.f32 %v1409_v12, 0.0 }
 0x3db   :  { %v1414_v57 = vpop.f32.mrb[26].mxu1  ;;  %1740 = vmatprep.subr.bf16.mxu0 %v1739_v8  ;;  %v1464_v45 = vmax.f32 %v1411_v48, 0.0 }
 0x3dc   :  { %v1415_v14 = vadd.f32 %v1414_v57, %v2738_v2  ;;  %v1416_v39 = vpop.f32.mrb[27].mxu1  ;;  %1742 = vmatpush1.bf16.msra.mxu0 %v1741_v4 }
 0x3dd   :  { %v1417_v34 = vadd.f32 %v1416_v39, %v2738_v2 }
 0x3de   :  { %v1465_v36 = vmax.f32 %v1415_v14, 0.0 }
 0x3df   :  { %v1466_v19 = vmax.f32 %v1417_v34, 0.0  ;;  %v1420_v17 = vpop.f32.mrb[28].mxu1 }
 0x3e0   :  { %v1745_v15 = vpack.c.bf16 %v1465_v36, %v1463_v18  ;;  %v1422_v22 = vpop.f32.mrb[29].mxu1  ;;  %v1421_v23 = vadd.f32 %v1420_v17, %v2740_v63 }
 0x3e1   :  { %v1743_v60 = vpack.c.bf16 %v1466_v19, %v1464_v45  ;;  %v1423_v0 = vadd.f32 %v1422_v22, %v2740_v63 }
 0x3e2   :  { %v1467_v27 = vmax.f32 %v1421_v23, 0.0 }
 0x3e3   :  { %v1426_v24 = vpop.f32.mrb[30].mxu1  ;;  %1744 = vmatprep.subr.bf16.mxu0 %v1743_v60  ;;  %v1468_v7 = vmax.f32 %v1423_v0, 0.0 }
 0x3e4   :  { %v1427_v26 = vadd.f32 %v1426_v24, %v2742_v43  ;;  %v1428_v30 = vpop.f32.mrb[31].mxu1  ;;  %1746 = vmatpush1.bf16.msra.mxu0 %v1745_v15 }
 0x3e5   :  { %v1429_v2 = vadd.f32 %v1428_v30, %v2742_v43 }
 0x3e6   :  { %v1469_v42 = vmax.f32 %v1427_v26, 0.0 }
 0x3e7   :  { %v1470_v28 = vmax.f32 %v1429_v2, 0.0  ;;  %v1432_v29 = vpop.f32.mrb[32].mxu1 }
 0x3e8   :  { %v1749_v44 = vpack.c.bf16 %v1469_v42, %v1467_v27  ;;  %v1434_v50 = vpop.f32.mrb[33].mxu1  ;;  %v1433_v9 = vadd.f32 %v1432_v29, %v2744_v47 }
 0x3e9   :  { %v1747_v54 = vpack.c.bf16 %v1470_v28, %v1468_v7  ;;  %v1435_v63 = vadd.f32 %v1434_v50, %v2744_v47  ;;  %v1476_v47 = vld [vmem:[#allocation20 + $0x8] sm:$0xff] }
 0x3ea   :  { %v1471_v32 = vmax.f32 %v1433_v9, 0.0 }
 0x3eb   :  { %v1438_v40 = vpop.f32.mrb[34].mxu1  ;;  %1748 = vmatprep.subr.bf16.mxu0 %v1747_v54  ;;  %v1472_v55 = vmax.f32 %v1435_v63, 0.0 }
 0x3ec   :  { %v1439_v20 = vadd.f32 %v1438_v40, %v2746_v37  ;;  %v1440_v49 = vpop.f32.mrb[35].mxu1  ;;  %1750 = vmatpush1.bf16.msra.mxu0 %v1749_v44 }
 0x3ed   :  { %v1441_v43 = vadd.f32 %v1440_v49, %v2746_v37 }
 0x3ee   :  { %v1473_v51 = vmax.f32 %v1439_v20, 0.0 }
 0x3ef   :  { %v1474_v1 = vmax.f32 %v1441_v43, 0.0 }
 0x3f0   :  { %v1753_v41 = vpack.c.bf16 %v1473_v51, %v1471_v32 }
 0x3f1   :  { %v1751_v62 = vpack.c.bf16 %v1474_v1, %v1472_v55 }
 0x3f3   :  { %1752 = vmatprep.subr.bf16.mxu0 %v1751_v62 }
 0x3f4   :  { %1754 = vmatpush1.bf16.msra.mxu0 %v1753_v41 }
 0x3f7   :  { %1554 = vmatmul.mubr.f32.vlgmr.msra.gmra.mrb[32].mxu0 %v1475_v52 }
 0x3f8   :  { %1559 = vmatprep.mubr.f32.mxu0 %v2160_v31 }
 0x3fb   :  { %1560 = vmatmul.mubr.f32.gmra.mrb[34].mxu0 %v1476_v47 }
 0x3fc   :  { %2092 = shalt.err (!%p2089_p10)
}
 0x3fd   :  { %s2093_s21 = scalar_lea.hbm %s2814_s13, 256 }
 0x3fe   :  { %p2094_p11 = scmp.ne.s32.totalorder %s2814_s13, %s2093_s21  ;;  %p2097_p12 = scmp.lt.u32.totalorder %s2093_s21, %s2814_s13 }
 0x400   :  { %p2099_p13 = pnand %p2097_p12, %p2094_p11 }
 0x402   :  { %2102 = shalt.err (!%p2099_p13)
}
 0x403   :  { %1591 = dma.vmem_to_hbm [thread:$0]  %s1586_s6, 256, %s2814_s13, [#allocation4], %s2144_s23, %s2144_s23, %s2145_s24   ;;  %v1482_v31 = vpop.permute.xlu0 %1481  ;;  %v1487_v6 = vpop.permute.xlu1 %1486 }
 0x404   :  { %s2162_s27 = smov [#allocation24]  }
 0x405   :  { %s1597_s4 = sshll.u32 %s2162_s27, 4  ;;  %s1598_s4 = int_to_ptr.vmem [resolvable:$true] %s1597_s4 }
 0x406   :  { %s2103_s8 = scalar_lea.vmem %s1598_s4, 256  ;;  %p2108_p1 = scmp.lt.s32.totalorder %s1598_s4, %s1598_s4 }
 0x407   :  { %p2104_p0 = scmp.ne.s32.totalorder %s1598_s4, %s2103_s8  ;;  %p2109_p2 = scmp.lt.s32.totalorder %s2103_s8, %s2103_s8 }
 0x409   :  { %p2110_p3 = por %p2109_p2, %p2108_p1 }
 0x40b   :  { %p2111_p4 = pnand %p2110_p3, %p2104_p0 }
 0x4ca   :  { %v1555_v37 = vpop.f32.mrb[32].mxu0 }
 0x4cb   :  { %v1556_v61 = vadd.f32 %v1555_v37, %v1482_v31  ;;  %v1557_v16 = vpop.f32.mrb[33].mxu0 }
 0x4cc   :  { %v1558_v53 = vadd.f32 %v1557_v16, %v1482_v31 }
 0x4ce   :  { %v1657_v13 = vpack.c.bf16 %v1558_v53, %v1556_v61  ;;  %v1561_v58 = vpop.f32.mrb[34].mxu0 }
 0x4cf   :  { %v1562_v59 = vadd.f32 %v1561_v58, %v1487_v6  ;;  %v1563_v11 = vpop.f32.mrb[35].mxu0 }
 0x4d0   :  { %1578 = vst [vmem:[#allocation24] sm:$0xff] %v1657_v13  ;;  %v1564_v56 = vadd.f32 %v1563_v11, %v1487_v6 }
 0x4d2   :  { %v1658_v25 = vpack.c.bf16 %v1564_v56, %v1562_v59 }
 0x4d4   :  { %1579 = vst [vmem:[#allocation24 + $0x8] sm:$0xff] %v1658_v25 }
 0x4d5   :  { %2114 = shalt.err (!%p2111_p4)
}
 0x4d6   :  { %s2115_s3 = scalar_lea.hbm %s2815_s14, 256 }
 0x4d7   :  { %p2116_p5 = scmp.ne.s32.totalorder %s2815_s14, %s2115_s3  ;;  %p2119_p6 = scmp.lt.u32.totalorder %s2115_s3, %s2815_s14 }
 0x4d9   :  { %p2121_p7 = pnand %p2119_p6, %p2116_p5 }
 0x4db   :  { %2124 = shalt.err (!%p2121_p7)
}
 0x4dc   :  { %1603 = dma.vmem_to_hbm [thread:$0]  %s1598_s4, 256, %s2815_s14, [#allocation25], %s2144_s23, %s2144_s23, %s2145_s24  }
 0x4dd   :  { %2139 = dma.done.wait [#allocation4], 256  }
 0x4de   :  { %2140 = vsyncadd [#allocation4], 4294967040 }
 0x4df   :  { %2141 = dma.done.wait [#allocation25], 256  }
 0x4e0   :  { %2142 = vsyncadd [#allocation25], 4294967040 }
 0x4e1   :  { %1610 = vsyncpa [#allocation3], 1 }
 0x4e2   :  { %1611 = vsyncpa [#allocation6], 1 }
 0x4e3   :  { %1612 = vsyncpa [#allocation9], 1 }
 0x4e4   :  { %1613 = vsyncpa [#allocation12], 1 }
 0x4e5   :  { %1614 = vsyncpa [#allocation15], 1 }
 0x4e6   :  { %1615 = vsyncpa [#allocation18], 1 }
 0x4e7   :  { %1616 = vsyncpa [#allocation21], 1 }
 0x4e8   :  { %1617 = vsyncpa [#allocation4], 1 }
 0x4e9   :  { %1618 = vsyncpa [#allocation25], 1 }

</bundles_post_ra>
